<compile_context>
chip_gen: v7x
topology: tpu7x:2x2x1
jax: 0.10.0
libtpu: 0.0.40
codegen_flags: <defaults>
</compile_context>

<pallas_src>
import math
from functools import partial
from time import time_ns

import jax
import jax.numpy as jnp
from jax.experimental import pallas as pl
from jax.experimental.pallas import tpu as pltpu

EPS = 1e-5
F32 = jnp.float32
BF16 = jnp.bfloat16


def _pick_tile(m, cap):
    """Largest multiple-of-8 divisor of m that is <= cap (m itself if m <= cap)."""
    if m <= cap:
        return m
    t = cap - (cap % 8)
    while t >= 8:
        if m % t == 0:
            return t
        t -= 8
    return m


# ----------------------------- Pallas kernels -----------------------------

def _matmul_bias_kernel(a_ref, b_ref, bias_ref, o_ref, acc_ref):
    """K-tiled matmul with f32 VMEM accumulator and fused bias epilogue."""
    @pl.when(pl.program_id(2) == 0)
    def _zero():
        acc_ref[...] = jnp.zeros_like(acc_ref)

    acc_ref[...] += jnp.dot(a_ref[...], b_ref[...],
                            preferred_element_type=jnp.float32)

    @pl.when(pl.program_id(2) == pl.num_programs(2) - 1)
    def _done():
        o_ref[...] = (acc_ref[...] + bias_ref[...]).astype(o_ref.dtype)


def _matmul_bias_stats_kernel(a_ref, b_ref, bias_ref, o_ref, s_ref, q_ref, acc_ref):
    """Matmul + bias + fused per-channel BN statistics (sum / sum-of-squares) epilogue."""
    @pl.when(pl.program_id(2) == 0)
    def _zero():
        acc_ref[...] = jnp.zeros_like(acc_ref)

    acc_ref[...] += jnp.dot(a_ref[...], b_ref[...],
                            preferred_element_type=jnp.float32)

    @pl.when(pl.program_id(2) == pl.num_programs(2) - 1)
    def _done():
        y = acc_ref[...] + bias_ref[...]
        o_ref[...] = y.astype(o_ref.dtype)
        s_ref[0] = jnp.sum(y, axis=0, keepdims=True)
        q_ref[0] = jnp.sum(y * y, axis=0, keepdims=True)


def _conv3x3_kernel(x_ref, w_ref, bias_ref, mask_ref, o_ref, s_ref, q_ref, *, wp, tq):
    """Direct 3x3 / stride-1 conv: 9-tap local-value accumulation over a resident padded
    flattened image, with fused bias and (junk-column-masked) BN statistics."""
    q0 = pl.program_id(2) * tq
    offs = (0, 1, 2, wp, wp + 1, wp + 2, 2 * wp, 2 * wp + 1, 2 * wp + 2)
    acc = jnp.dot(x_ref[0, pl.ds(q0 + offs[0], tq), :], w_ref[0],
                  preferred_element_type=jnp.float32)
    for t in range(1, 9):
        acc = acc + jnp.dot(x_ref[0, pl.ds(q0 + offs[t], tq), :], w_ref[t],
                            preferred_element_type=jnp.float32)
    y = acc + bias_ref[...]
    o_ref[0] = y.astype(o_ref.dtype)
    yv = y * mask_ref[...]                      # zero out the 2 junk columns per row
    s_ref[0, 0] = jnp.sum(yv, axis=0, keepdims=True)
    q_ref[0, 0] = jnp.sum(yv * yv, axis=0, keepdims=True)


def _affine_pad_kernel(x_ref, scale_ref, shift_ref, o_ref, *, h, w, wp):
    """BN affine + ReLU fused with zero padding into the flattened layout the 3x3 conv eats."""
    o_ref[...] = jnp.zeros_like(o_ref)
    s = scale_ref[...]
    b = shift_ref[...]
    for r in range(h):
        row = x_ref[0, pl.ds(r * w, w), :].astype(jnp.float32)
        y = jnp.maximum(row * s + b, 0.0)
        o_ref[0, pl.ds((r + 1) * wp + 1, w), :] = y.astype(o_ref.dtype)


def _affine_relu_kernel(x_ref, scale_ref, shift_ref, o_ref, *, wout):
    """BN affine + ReLU; also strips trailing junk columns when wout < input width."""
    y = x_ref[0, :, :wout, :].astype(jnp.float32) * scale_ref[...] + shift_ref[...]
    o_ref[0] = jnp.maximum(y, 0.0).astype(o_ref.dtype)


def _bn_add_relu_kernel(y_ref, r_ref, s3_ref, b3_ref, o_ref):
    v = (y_ref[...].astype(jnp.float32) * s3_ref[...] + b3_ref[...]
         + r_ref[...].astype(jnp.float32))
    o_ref[...] = jnp.maximum(v, 0.0).astype(o_ref.dtype)


def _bn_add_bn_relu_kernel(y_ref, r_ref, s3_ref, b3_ref, sd_ref, bd_ref, o_ref):
    v = (y_ref[...].astype(jnp.float32) * s3_ref[...] + b3_ref[...]
         + r_ref[...].astype(jnp.float32) * sd_ref[...] + bd_ref[...])
    o_ref[...] = jnp.maximum(v, 0.0).astype(o_ref.dtype)


def _maxpool_affine_kernel(x_ref, scale_ref, shift_ref, o_ref, *, th):
    """3x3 / stride-2 / pad-1 max pool on the RAW stem activation, with the stem BN affine
    + ReLU applied after the max (valid since the BN scale gamma*rsqrt(var+eps) > 0)."""
    hb = pl.program_id(1)
    wo = o_ref.shape[2]
    c = o_ref.shape[3]
    s = scale_ref[...]
    b = shift_ref[...]
    for t in range(th):
        r = x_ref[0, pl.ds(hb * (2 * th) + 2 * t, 3), :, :]       # (3, Wp/2, 2C)
        cm = jnp.maximum(jnp.maximum(r[:, :wo, :c], r[:, :wo, c:]),
                         r[:, 1:wo + 1, :c])                      # (3, wo, C)
        m = jnp.maximum(jnp.maximum(cm[0], cm[1]), cm[2]).astype(jnp.float32)
        o_ref[0, t] = jnp.maximum(m * s + b, 0.0).astype(o_ref.dtype)


def _mean_kernel(x_ref, o_ref):
    o_ref[...] = jnp.mean(x_ref[...].astype(jnp.float32), axis=1)


# ----------------------------- Pallas wrappers -----------------------------

def _matmul_tiles(M, K, N):
    tm = _pick_tile(M, 512)
    tn = N
    for cand in (512, 256, 128):
        if N % cand == 0:
            tn = cand
            break
    tk = K
    if K > 512 and K % 128 == 0:
        for cand in (512, 384, 256, 128):
            if K % cand == 0:
                tk = cand
                break
    return tm, tn, tk


def matmul_bias(a, b, bias, out_dtype=BF16, with_stats=False):
    """a: (M, K) bf16, b: (K, N) bf16, bias: (N,) f32 -> (M, N) [+ per-block BN stats]."""
    M, K = a.shape
    _, N = b.shape
    tm, tn, tk = _matmul_tiles(M, K, N)
    grid = (M // tm, N // tn, K // tk)
    in_specs = [
        pl.BlockSpec((tm, tk), lambda i, j, k: (i, k)),
        pl.BlockSpec((tk, tn), lambda i, j, k: (k, j)),
        pl.BlockSpec((1, tn), lambda i, j, k: (0, j)),
    ]
    cparams = pltpu.CompilerParams(
        dimension_semantics=("parallel", "parallel", "arbitrary"))
    if not with_stats:
        return pl.pallas_call(
            _matmul_bias_kernel,
            out_shape=jax.ShapeDtypeStruct((M, N), out_dtype),
            grid=grid,
            in_specs=in_specs,
            out_specs=pl.BlockSpec((tm, tn), lambda i, j, k: (i, j)),
            scratch_shapes=[pltpu.VMEM((tm, tn), jnp.float32)],
            compiler_params=cparams,
        )(a, b, bias.reshape(1, N))
    mi = M // tm
    y, s, q = pl.pallas_call(
        _matmul_bias_stats_kernel,
        out_shape=(jax.ShapeDtypeStruct((M, N), out_dtype),
                   jax.ShapeDtypeStruct((mi, 1, N), F32),
                   jax.ShapeDtypeStruct((mi, 1, N), F32)),
        grid=grid,
        in_specs=in_specs,
        out_specs=(pl.BlockSpec((tm, tn), lambda i, j, k: (i, j)),
                   pl.BlockSpec((1, 1, tn), lambda i, j, k: (i, 0, j)),
                   pl.BlockSpec((1, 1, tn), lambda i, j, k: (i, 0, j))),
        scratch_shapes=[pltpu.VMEM((tm, tn), jnp.float32)],
        compiler_params=cparams,
    )(a, b, bias.reshape(1, N))
    return y, s, q


def bn_coeffs(s_part, q_part, count, gamma, beta):
    """Fold fused per-block sums into BN scale/shift (training-mode batch statistics)."""
    axes = tuple(range(s_part.ndim - 1))
    s = jnp.sum(s_part, axis=axes)
    q = jnp.sum(q_part, axis=axes)
    mean = s / count
    var = jnp.maximum(q / count - mean * mean, 0.0)   # biased variance (matches torch BN)
    scale = gamma * jax.lax.rsqrt(var + EPS)
    shift = beta - mean * scale
    return scale, shift


def conv1x1_stats(x, w_kc, bias, stride=1):
    """1x1 convolution with fused BN statistics; stride handled by a cheap spatial slice."""
    N, H, W, Cin = x.shape
    if stride > 1:
        # TODO(synk): stride-2 subsampling left as XLA strided-slice glue (4 instances).
        x = x[:, ::stride, ::stride, :]
        H, W = x.shape[1], x.shape[2]
    Cout = w_kc.shape[1]
    y, s, q = matmul_bias(x.reshape(N * H * W, Cin), w_kc, bias, with_stats=True)
    return y.reshape(N, H, W, Cout), s, q


def bn_relu_pad(y_flat, scale, shift, N, H, W):
    """(N*H*W, C) raw conv output -> (N, (H+3)*(W+2), C) padded, post-BN-ReLU, flattened."""
    C = y_flat.shape[1]
    Wp = W + 2
    Qx = (H + 3) * Wp
    x3 = y_flat.reshape(N, H * W, C)
    return pl.pallas_call(
        partial(_affine_pad_kernel, h=H, w=W, wp=Wp),
        out_shape=jax.ShapeDtypeStruct((N, Qx, C), BF16),
        grid=(N,),
        in_specs=[pl.BlockSpec((1, H * W, C), lambda n: (n, 0, 0)),
                  pl.BlockSpec((1, C), lambda n: (0, 0)),
                  pl.BlockSpec((1, C), lambda n: (0, 0))],
        out_specs=pl.BlockSpec((1, Qx, C), lambda n: (n, 0, 0)),
        compiler_params=pltpu.CompilerParams(dimension_semantics=("parallel",)),
    )(x3, scale.reshape(1, C), shift.reshape(1, C))


def conv3x3_s1(xpad_flat, w9, bias, H, W):
    """Direct 3x3 / stride-1 / pad-1 conv on the padded flattened image (already BN+ReLU).
    Returns ((N, H, W+2, Cout) with 2 junk cols per row, masked stats partials)."""
    N, Qx, Cin = xpad_flat.shape
    Cout = w9.shape[2]
    Wp = W + 2
    Qout = H * Wp
    tq = _pick_tile(Qout, 2048)
    tn = Cout if Cout <= 256 else 256
    qb = Qout // tq
    cb = Cout // tn
    mask = (jnp.arange(Qout) % Wp < W).astype(F32).reshape(Qout, 1)
    y, s, q = pl.pallas_call(
        partial(_conv3x3_kernel, wp=Wp, tq=tq),
        out_shape=(jax.ShapeDtypeStruct((N, Qout, Cout), BF16),
                   jax.ShapeDtypeStruct((N, qb, 1, Cout), F32),
                   jax.ShapeDtypeStruct((N, qb, 1, Cout), F32)),
        grid=(N, cb, qb),
        in_specs=[
            pl.BlockSpec((1, Qx, Cin), lambda n, c, q: (n, 0, 0)),   # resident per image
            pl.BlockSpec((9, Cin, tn), lambda n, c, q: (0, 0, c)),
            pl.BlockSpec((1, tn), lambda n, c, q: (0, c)),
            pl.BlockSpec((tq, 1), lambda n, c, q: (q, 0)),
        ],
        out_specs=(pl.BlockSpec((1, tq, tn), lambda n, c, q: (n, q, c)),
                   pl.BlockSpec((1, 1, 1, tn), lambda n, c, q: (n, q, 0, c)),
                   pl.BlockSpec((1, 1, 1, tn), lambda n, c, q: (n, q, 0, c))),
        compiler_params=pltpu.CompilerParams(
            dimension_semantics=("parallel", "parallel", "parallel")),
    )(xpad_flat, w9, bias.reshape(1, Cout), mask)
    return y.reshape(N, H, Wp, Cout), s, q


def conv3x3_s2(x, w_flat, bias):
    """3x3 stride-2 conv (only 3 instances): bf16 im2col + Pallas matmul + fused stats."""
    # TODO(synk): stride-2 im2col patch extraction kept in plain XLA glue (3 instances).
    N, H, W, Cin = x.shape
    Cout = w_flat.shape[1]
    Ho = (H + 2 - 3) // 2 + 1
    Wo = (W + 2 - 3) // 2 + 1
    xp = jnp.pad(x, ((0, 0), (1, 1), (1, 1), (0, 0)))
    cols = [xp[:, i:i + 2 * (Ho - 1) + 1:2, j:j + 2 * (Wo - 1) + 1:2, :]
            for i in range(3) for j in range(3)]
    patches = jnp.concatenate(cols, axis=-1).reshape(N * Ho * Wo, 9 * Cin)
    y, s, q = matmul_bias(patches, w_flat, bias, with_stats=True)
    return y.reshape(N, Ho, Wo, Cout), s, q


def bn_relu(x4, scale, shift, wout=None):
    """BN affine + ReLU over (N, R, Win, C); strips trailing junk columns when wout < Win."""
    N, R, Win, C = x4.shape
    Wout = Win if wout is None else wout
    return pl.pallas_call(
        partial(_affine_relu_kernel, wout=Wout),
        out_shape=jax.ShapeDtypeStruct((N, R, Wout, C), BF16),
        grid=(N,),
        in_specs=[pl.BlockSpec((1, R, Win, C), lambda n: (n, 0, 0, 0)),
                  pl.BlockSpec((1, C), lambda n: (0, 0)),
                  pl.BlockSpec((1, C), lambda n: (0, 0))],
        out_specs=pl.BlockSpec((1, R, Wout, C), lambda n: (n, 0, 0, 0)),
        compiler_params=pltpu.CompilerParams(dimension_semantics=("parallel",)),
    )(x4, scale.reshape(1, C), shift.reshape(1, C))


def bn_add_relu(y, res, scale, shift, res_scale=None, res_shift=None):
    """relu(bn3(y) + res), where res is either a clean activation or a raw downsample conv
    output (then res_scale / res_shift apply the downsample BN affine in the same pass)."""
    M, C = y.shape
    tm = _pick_tile(M, 1024)
    grid = (M // tm,)
    cparams = pltpu.CompilerParams(dimension_semantics=("parallel",))
    vspec = pl.BlockSpec((1, C), lambda i: (0, 0))
    mspec = pl.BlockSpec((tm, C), lambda i: (i, 0))
    if res_scale is None:
        return pl.pallas_call(
            _bn_add_relu_kernel,
            out_shape=jax.ShapeDtypeStruct((M, C), BF16),
            grid=grid,
            in_specs=[mspec, mspec, vspec, vspec],
            out_specs=mspec,
            compiler_params=cparams,
        )(y, res, scale.reshape(1, C), shift.reshape(1, C))
    return pl.pallas_call(
        _bn_add_bn_relu_kernel,
        out_shape=jax.ShapeDtypeStruct((M, C), BF16),
        grid=grid,
        in_specs=[mspec, mspec, vspec, vspec, vspec, vspec],
        out_specs=mspec,
        compiler_params=cparams,
    )(y, res, scale.reshape(1, C), shift.reshape(1, C),
      res_scale.reshape(1, C), res_shift.reshape(1, C))


@jax.jit
def maxpool_bn_relu(y_raw, scale, shift):
    """Max pool 3x3/s2/p1 on the raw stem output with the stem BN affine + ReLU fused in."""
    N, H, W, C = y_raw.shape
    Ho = (H + 2 - 3) // 2 + 1
    Wo = (W + 2 - 3) // 2 + 1
    # TODO(synk): -inf border pad kept as XLA glue (single, small stem tensor).
    xp = jnp.pad(y_raw, ((0, 0), (1, 1), (1, 1), (0, 0)), constant_values=-jnp.inf)
    # fold column pairs into the lane dim -> (N, H+2, (W+2)//2, 2C): lane-dense, read once
    xr = xp.reshape(N, H + 2, (W + 2) // 2, 2 * C)
    th = 8
    return pl.pallas_call(
        partial(_maxpool_affine_kernel, th=th),
        out_shape=jax.ShapeDtypeStruct((N, Ho, Wo, C), BF16),
        grid=(N, Ho // th),
        in_specs=[pl.BlockSpec((1, H + 2, (W + 2) // 2, 2 * C),
                               lambda n, h: (n, 0, 0, 0)),
                  pl.BlockSpec((1, C), lambda n, h: (0, 0)),
                  pl.BlockSpec((1, C), lambda n, h: (0, 0))],
        out_specs=pl.BlockSpec((1, th, Wo, C), lambda n, h: (n, h, 0, 0)),
        compiler_params=pltpu.CompilerParams(
            dimension_semantics=("parallel", "parallel")),
    )(xr, scale.reshape(1, C), shift.reshape(1, C))


# ----------------------------- network pieces -----------------------------

@jax.jit
def stem(x_nchw, w147, bias, gamma, beta):
    """Conv2d(3, 64, k=7, s=2, p=3) with fused BN stats; the BN affine + ReLU is deferred
    into the max-pool kernel.  Returns (raw conv output NHWC, bn scale, bn shift)."""
    x = jnp.transpose(x_nchw, (0, 2, 3, 1)).astype(BF16)      # NCHW -> NHWC, bf16
    N, H, W, Cin = x.shape
    Ho = (H + 6 - 7) // 2 + 1
    Wo = (W + 6 - 7) // 2 + 1
    # TODO(synk): one-time 7x7 stride-2 im2col kept in plain XLA glue (input is tiny).
    xp = jnp.pad(x, ((0, 0), (3, 3), (3, 3), (0, 0)))
    cols = [xp[:, i:i + 2 * (Ho - 1) + 1:2, j:j + 2 * (Wo - 1) + 1:2, :]
            for i in range(7) for j in range(7)]
    patches = jnp.concatenate(cols, axis=-1).reshape(N * Ho * Wo, 49 * Cin)
    y, s, q = matmul_bias(patches, w147, bias, with_stats=True)
    scale, shift = bn_coeffs(s, q, N * Ho * Wo, gamma, beta)
    return y.reshape(N, Ho, Wo, 64), scale, shift


@partial(jax.jit, static_argnames=("stride", "has_downsample"))
def res_block(x, p, *, stride, has_downsample):
    N, H, W, Cin = x.shape
    M = N * H * W
    planes = p["w1"].shape[1]
    C4 = p["w3"].shape[1]

    # conv1 (1x1) with fused bn1 stats
    y1, s1, q1 = matmul_bias(x.reshape(M, Cin), p["w1"], p["b1"], with_stats=True)
    sc1, sh1 = bn_coeffs(s1, q1, M, p["g1"], p["bt1"])

    if stride == 1:
        # bn1 affine + ReLU fused with zero-padding into the conv3x3 input layout
        x2p = bn_relu_pad(y1, sc1, sh1, N, H, W)
        y2p, s2, q2 = conv3x3_s1(x2p, p["w2"], p["b2"], H, W)
        Ho, Wo = H, W
        sc2, sh2 = bn_coeffs(s2, q2, N * Ho * Wo, p["g2"], p["bt2"])
        x3 = bn_relu(y2p, sc2, sh2, wout=Wo)          # strips the 2 junk cols per row
    else:
        y1a = bn_relu(y1.reshape(N, H, W, planes), sc1, sh1)
        y2, s2, q2 = conv3x3_s2(y1a, p["w2"], p["b2"])
        Ho, Wo = y2.shape[1], y2.shape[2]
        sc2, sh2 = bn_coeffs(s2, q2, N * Ho * Wo, p["g2"], p["bt2"])
        x3 = bn_relu(y2, sc2, sh2)

    Mo = N * Ho * Wo
    y3, s3, q3 = matmul_bias(x3.reshape(Mo, planes), p["w3"], p["b3"], with_stats=True)
    sc3, sh3 = bn_coeffs(s3, q3, Mo, p["g3"], p["bt3"])

    if has_downsample:
        rd, sd, qd = conv1x1_stats(x, p["wd"], p["bd"], stride=stride)
        scd, shd = bn_coeffs(sd, qd, Mo, p["gd"], p["btd"])
        out = bn_add_relu(y3, rd.reshape(Mo, C4), sc3, sh3, scd, shd)
    else:
        out = bn_add_relu(y3, x.reshape(Mo, C4), sc3, sh3)
    return out.reshape(N, Ho, Wo, C4)


@jax.jit
def head(x, fc_wT, fc_b):
    # AvgPool2d(7, stride=1) on the 7x7 map -> (N, C), then Linear(2048, num_classes)
    N, H, W, C = x.shape
    x3 = x.reshape(N, H * W, C)
    pooled = pl.pallas_call(
        _mean_kernel,
        out_shape=jax.ShapeDtypeStruct((N, C), F32),
        grid=(1,),
        in_specs=[pl.BlockSpec((N, H * W, C), lambda i: (0, 0, 0))],
        out_specs=pl.BlockSpec((N, C), lambda i: (0, 0)),
    )(x3)
    return matmul_bias(pooled.astype(BF16), fc_wT, fc_b, out_dtype=F32, with_stats=False)


def run_stage(x, blocks):
    for p in blocks:
        weights = {k: v for k, v in p.items() if k not in ("stride", "has_downsample")}
        x = res_block(x, weights, stride=p["stride"],
                      has_downsample=p["has_downsample"])
    return x


# ----------------------------- parameter init -----------------------------

def _conv_params(key, cout, cin, kh, kw, bias=True):
    kw_key, kb_key = jax.random.split(key)
    fan_out = cout * kh * kw
    std = math.sqrt(2.0 / fan_out)                 # kaiming_normal_, mode='fan_out', relu
    w = std * jax.random.normal(kw_key, (cout, cin, kh, kw), F32)
    if not bias:
        return w, None
    fan_in = cin * kh * kw
    bound = 1.0 / math.sqrt(fan_in)
    b = jax.random.uniform(kb_key, (cout,), F32, -bound, bound)
    return w, b


def _to_1x1(w):        # OIHW (O,I,1,1) -> (I, O) bf16
    return jnp.transpose(w[:, :, 0, 0], (1, 0)).astype(BF16)


def _to_3x3_taps(w):   # OIHW (O,I,3,3) -> (9, I, O) bf16
    return jnp.transpose(w, (2, 3, 1, 0)).reshape(9, w.shape[1], w.shape[0]).astype(BF16)


def _to_flat(w):       # OIHW -> (kh*kw*I, O) bf16   (im2col layout)
    o, i, kh, kw_ = w.shape
    return jnp.transpose(w, (2, 3, 1, 0)).reshape(kh * kw_ * i, o).astype(BF16)


def init_params(key, num_classes=4, layers=(3, 4, 23, 3)):
    n_keys = 8 + 4 * sum(layers) + 4
    keys = iter(jax.random.split(key, n_keys))
    params = {}
    w, b = _conv_params(next(keys), 64, 3, 7, 7)
    params["conv1_w"] = _to_flat(w)
    params["conv1_b"] = b
    params["bn1_g"] = jnp.ones((64,), F32)
    params["bn1_b"] = jnp.zeros((64,), F32)

    in_planes = 64
    planes_list = (64, 128, 256, 512)
    strides = (1, 2, 2, 2)
    stages = []
    for nblocks, planes, stride0 in zip(layers, planes_list, strides):
        blocks = []
        for bi in range(nblocks):
            s = stride0 if bi == 0 else 1
            ds = (s != 1) or (in_planes != planes * 4)
            p = {"stride": s, "has_downsample": ds}
            w1, b1 = _conv_params(next(keys), planes, in_planes, 1, 1)
            p["w1"], p["b1"] = _to_1x1(w1), b1
            p["g1"], p["bt1"] = jnp.ones((planes,), F32), jnp.zeros((planes,), F32)
            w2, b2 = _conv_params(next(keys), planes, planes, 3, 3)
            p["w2"] = _to_3x3_taps(w2) if s == 1 else _to_flat(w2)
            p["b2"] = b2
            p["g2"], p["bt2"] = jnp.ones((planes,), F32), jnp.zeros((planes,), F32)
            w3, b3 = _conv_params(next(keys), planes * 4, planes, 1, 1)
            p["w3"], p["b3"] = _to_1x1(w3), b3
            p["g3"], p["bt3"] = jnp.ones((planes * 4,), F32), jnp.zeros((planes * 4,), F32)
            if ds:
                wd, _ = _conv_params(next(keys), planes * 4, in_planes, 1, 1, bias=False)
                p["wd"] = _to_1x1(wd)
                p["bd"] = jnp.zeros((planes * 4,), F32)        # downsample conv: bias=False
                p["gd"], p["btd"] = (jnp.ones((planes * 4,), F32),
                                     jnp.zeros((planes * 4,), F32))
            blocks.append(p)
            in_planes = planes * 4
        stages.append(blocks)
    params["stages"] = stages

    fan_in = 512 * 4
    bound = 1.0 / math.sqrt(fan_in)
    kw_, kb_ = jax.random.split(next(keys))
    fc_w = jax.random.uniform(kw_, (num_classes, fan_in), F32, -bound, bound)
    params["fc_wT"] = jnp.transpose(fc_w, (1, 0)).astype(BF16)
    params["fc_b"] = jax.random.uniform(kb_, (num_classes,), F32, -bound, bound)
    return params


# ----------------------------- forward (mirrors torch module) -----------------------------

def get_tensor_bytes(a):
    return a.size * a.dtype.itemsize


def forward(params, x_nchw):
    # NOTE: no device syncs between stages (kernels dispatch asynchronously); the dfn
    # entries are host dispatch timestamps, matching the un-synchronised torch reference.
    time0 = time_ns()
    mem0 = get_tensor_bytes(x_nchw)
    y1, sc1, sh1 = stem(x_nchw, params["conv1_w"], params["conv1_b"],
                        params["bn1_g"], params["bn1_b"])
    time1 = time_ns(); mem1 = get_tensor_bytes(y1)
    x = maxpool_bn_relu(y1, sc1, sh1)
    x = run_stage(x, params["stages"][0])
    time2 = time_ns(); mem2 = get_tensor_bytes(x)
    x = run_stage(x, params["stages"][1])
    time3 = time_ns(); mem3 = get_tensor_bytes(x)
    x = run_stage(x, params["stages"][2])
    time4 = time_ns(); mem4 = get_tensor_bytes(x)
    x = run_stage(x, params["stages"][3])
    time5 = time_ns(); mem5 = get_tensor_bytes(x)
    x = head(x, params["fc_wT"], params["fc_b"])
    time6 = time_ns(); mem6 = get_tensor_bytes(x)
    dfn = ('0us',
           str((time1 - time0) * 1e-6) + 'ms',
           str((time2 - time0) * 1e-6) + 'ms',
           str((time3 - time0) * 1e-6) + 'ms',
           str((time4 - time0) * 1e-6) + 'ms',
           str((time5 - time0) * 1e-6) + 'ms',
           str((time6 - time0) * 1e-6) + 'ms')
    mem_seq = (mem0, mem1, mem2, mem3, mem4, mem5, mem6)
    return x, dfn, mem_seq


if __name__ == "__main__":
    key = jax.random.PRNGKey(0)
    params = init_params(key, num_classes=4, layers=(3, 4, 23, 3))
    # The architecture (AvgPool2d(7) after four stride-2 reductions) implies 224x224 input.
    x = jax.random.normal(jax.random.PRNGKey(0), (2, 3, 224, 224), F32)
    logits, dfn, mem_seq = forward(params, x)
    jax.block_until_ready(logits)
    assert logits.shape == (2, 4)
    assert bool(jnp.all(jnp.isfinite(logits)))
    print("KERNEL_OK")
</pallas_src>

<mosaic_0001>
module attributes {stable_mosaic.version = 11 : i64} {
  func.func @_matmul_bias_stats_kernel(%arg0: i32, %arg1: i32, %arg2: i32, %arg3: memref<512x147xbf16, #tpu.memory_space<vmem>>, %arg4: memref<147x64xbf16, #tpu.memory_space<vmem>>, %arg5: memref<1x64xf32, #tpu.memory_space<vmem>>, %arg6: memref<512x64xbf16, #tpu.memory_space<vmem>>, %arg7: memref<1x1x64xf32, #tpu.memory_space<vmem>>, %arg8: memref<1x1x64xf32, #tpu.memory_space<vmem>>, %arg9: memref<512x64xf32, #tpu.memory_space<vmem>>) attributes {dimension_semantics = [#tpu.dimension_semantics<parallel>, #tpu.dimension_semantics<parallel>, #tpu.dimension_semantics<arbitrary>], iteration_bounds = array<i64: 49, 1, 1>, scalar_prefetch = 0 : i64, scratch_operands = 1 : i64, tpu.core_type = #tpu.core_type<tc>, window_params = [{transform_indices = @transform_0, window_bounds = array<i64: 512, 147>}, {transform_indices = @transform_1, window_bounds = array<i64: 147, 64>}, {transform_indices = @transform_2, window_bounds = array<i64: 1, 64>}, {transform_indices = @transform_3, window_bounds = array<i64: 512, 64>}, {transform_indices = @transform_4, window_bounds = array<i64: 1, 1, 64>}, {transform_indices = @transform_5, window_bounds = array<i64: 1, 1, 64>}]} {
    %c0_i32 = arith.constant 0 : i32
    %0 = arith.cmpi eq, %arg2, %c0_i32 : i32
    %1 = arith.extui %0 : i1 to i32
    %c0_i32_0 = arith.constant 0 : i32
    %2 = arith.cmpi ne, %1, %c0_i32_0 : i32
    scf.if %2 {
      %cst_10 = arith.constant 0.000000e+00 : f32
      %12 = vector.broadcast %cst_10 : f32 to vector<512x64xf32>
      %c0_11 = arith.constant 0 : index
      %c0_12 = arith.constant 0 : index
      %13 = vector.load %arg9[%c0_11, %c0_12] : memref<512x64xf32, #tpu.memory_space<vmem>>, vector<512x64xf32>
      tpu.vector_store %arg9[%c0_11, %c0_12], %12 {strides = array<i32>} : memref<512x64xf32, #tpu.memory_space<vmem>>, vector<512x64xf32>,
    } else {
    }
    %c0 = arith.constant 0 : index
    %c0_1 = arith.constant 0 : index
    %3 = vector.load %arg9[%c0, %c0_1] : memref<512x64xf32, #tpu.memory_space<vmem>>, vector<512x64xf32>
    %c0_2 = arith.constant 0 : index
    %c0_3 = arith.constant 0 : index
    %4 = vector.load %arg3[%c0_2, %c0_3] : memref<512x147xbf16, #tpu.memory_space<vmem>>, vector<512x147xbf16>
    %c0_4 = arith.constant 0 : index
    %c0_5 = arith.constant 0 : index
    %5 = vector.load %arg4[%c0_4, %c0_5] : memref<147x64xbf16, #tpu.memory_space<vmem>>, vector<147x64xbf16>
    %cst = arith.constant dense<0.000000e+00> : vector<512x64xf32>
    %6 = tpu.matmul %4, %5, %cst {dimension_numbers = #tpu.dot_dimension_numbers<[1], [0], [0], [1], [0, 0, 1, 1], [], []>} : vector<512x147xbf16>, vector<147x64xbf16>, vector<512x64xf32> -> vector<512x64xf32>
    %7 = arith.addf %3, %6 : vector<512x64xf32>
    %c0_6 = arith.constant 0 : index
    %c0_7 = arith.constant 0 : index
    %8 = vector.load %arg9[%c0_6, %c0_7] : memref<512x64xf32, #tpu.memory_space<vmem>>, vector<512x64xf32>
    tpu.vector_store %arg9[%c0_6, %c0_7], %7 {strides = array<i32>} : memref<512x64xf32, #tpu.memory_space<vmem>>, vector<512x64xf32>,
    %c0_i32_8 = arith.constant 0 : i32
    %9 = arith.cmpi eq, %arg2, %c0_i32_8 : i32
    %10 = arith.extui %9 : i1 to i32
    %c0_i32_9 = arith.constant 0 : i32
    %11 = arith.cmpi ne, %10, %c0_i32_9 : i32
    scf.if %11 {
      %c0_10 = arith.constant 0 : index
      %c0_11 = arith.constant 0 : index
      %12 = vector.load %arg9[%c0_10, %c0_11] : memref<512x64xf32, #tpu.memory_space<vmem>>, vector<512x64xf32>
      %c0_12 = arith.constant 0 : index
      %c0_13 = arith.constant 0 : index
      %13 = vector.load %arg5[%c0_12, %c0_13] : memref<1x64xf32, #tpu.memory_space<vmem>>, vector<1x64xf32>
      %14 = vector.broadcast %13 : vector<1x64xf32> to vector<512x64xf32>
      %15 = arith.addf %12, %14 : vector<512x64xf32>
      %16 = arith.truncf %15 : vector<512x64xf32> to vector<512x64xbf16>
      %c0_14 = arith.constant 0 : index
      %c0_15 = arith.constant 0 : index
      %17 = vector.load %arg6[%c0_14, %c0_15] : memref<512x64xbf16, #tpu.memory_space<vmem>>, vector<512x64xbf16>
      tpu.vector_store %arg6[%c0_14, %c0_15], %16 {strides = array<i32>} : memref<512x64xbf16, #tpu.memory_space<vmem>>, vector<512x64xbf16>,
      %cst_16 = arith.constant dense<0.000000e+00> : vector<64xf32>
      %18 = vector.multi_reduction <add>, %15, %cst_16 [0] : vector<512x64xf32> to vector<64xf32>
      %19 = vector.shape_cast %18 : vector<64xf32> to vector<1x64xf32>
      %c0_17 = arith.constant 0 : index
      %c0_18 = arith.constant 0 : index
      %c0_19 = arith.constant 0 : index
      %20 = vector.load %arg7[%c0_17, %c0_18, %c0_19] : memref<1x1x64xf32, #tpu.memory_space<vmem>>, vector<1x1x64xf32>
      %21 = vector.shape_cast %20 : vector<1x1x64xf32> to vector<1x64xf32>
      %22 = vector.shape_cast %19 : vector<1x64xf32> to vector<1x1x64xf32>
      tpu.vector_store %arg7[%c0_17, %c0_18, %c0_19], %22 {strides = array<i32>} : memref<1x1x64xf32, #tpu.memory_space<vmem>>, vector<1x1x64xf32>,
      %23 = arith.mulf %15, %15 : vector<512x64xf32>
      %cst_20 = arith.constant dense<0.000000e+00> : vector<64xf32>
      %24 = vector.multi_reduction <add>, %23, %cst_20 [0] : vector<512x64xf32> to vector<64xf32>
      %25 = vector.shape_cast %24 : vector<64xf32> to vector<1x64xf32>
      %c0_21 = arith.constant 0 : index
      %c0_22 = arith.constant 0 : index
      %c0_23 = arith.constant 0 : index
      %26 = vector.load %arg8[%c0_21, %c0_22, %c0_23] : memref<1x1x64xf32, #tpu.memory_space<vmem>>, vector<1x1x64xf32>
      %27 = vector.shape_cast %26 : vector<1x1x64xf32> to vector<1x64xf32>
      %28 = vector.shape_cast %25 : vector<1x64xf32> to vector<1x1x64xf32>
      tpu.vector_store %arg8[%c0_21, %c0_22, %c0_23], %28 {strides = array<i32>} : memref<1x1x64xf32, #tpu.memory_space<vmem>>, vector<1x1x64xf32>,
    } else {
    }
    return
  }
  func.func @transform_0(%arg0: i32, %arg1: i32, %arg2: i32) -> (i32, i32) {
    %c0_i32 = arith.constant 0 : i32
    return %arg0, %arg2 : i32, i32
  }
  func.func @transform_1(%arg0: i32, %arg1: i32, %arg2: i32) -> (i32, i32) {
    %c0_i32 = arith.constant 0 : i32
    return %arg2, %arg1 : i32, i32
  }
  func.func @transform_2(%arg0: i32, %arg1: i32, %arg2: i32) -> (i32, i32) {
    %c0_i32 = arith.constant 0 : i32
    %c0_i32_0 = arith.constant 0 : i32
    return %c0_i32, %arg1 : i32, i32
  }
  func.func @transform_3(%arg0: i32, %arg1: i32, %arg2: i32) -> (i32, i32) {
    %c0_i32 = arith.constant 0 : i32
    return %arg0, %arg1 : i32, i32
  }
  func.func @transform_4(%arg0: i32, %arg1: i32, %arg2: i32) -> (i32, i32, i32) {
    %c0_i32 = arith.constant 0 : i32
    %c0_i32_0 = arith.constant 0 : i32
    return %arg0, %c0_i32, %arg1 : i32, i32, i32
  }
  func.func @transform_5(%arg0: i32, %arg1: i32, %arg2: i32) -> (i32, i32, i32) {
    %c0_i32 = arith.constant 0 : i32
    %c0_i32_0 = arith.constant 0 : i32
    return %arg0, %c0_i32, %arg1 : i32, i32, i32
  }
}

</mosaic_0001>

<bundles_post_ra>
// kernel: stem.1
= control target key start
LH: loop header
LB: loop body
LE: loop exit
PB: predicated region body
PF: predicated region fallthrough
CT: control target
= control target key end

     0   :  { %s2875_s18 = smov 0   ;;  %s2877_s19 = smov 0   ;;  %s3970_s0 = inlined_call_operand.vmem [shape: bf16[25088,147], index: 0, kind: input, shape index: {}]   ;;  %s3971_s1 = inlined_call_operand.vmem [shape: bf16[147,64], index: 1, kind: input, shape index: {}]   ;;  %s3972_s2 = inlined_call_operand.vmem [shape: f32[1,64], index: 2, kind: input, shape index: {}]   ;;  %s3973_s3 = inlined_call_operand.vmem [shape: bf16[25088,64], index: 3, kind: output, shape index: {0}]   ;;  %s3974_s4 = inlined_call_operand.vmem [shape: f32[49,1,64], index: 4, kind: output, shape index: {1}]   ;;  %s3975_s5 = inlined_call_operand.vmem [shape: f32[49,1,64], index: 5, kind: output, shape index: {2}]  }
   0x1   :  { %s2879_s20 = smov 0  }
   0x2 LB: > { %s35_s21 = sadd.s32 1, %s2836_s19  ;;  %p2420_p0 = scmp.ge.s32.totalorder %s2840_s20, 1  ;;  %s2840_s20 = sphi %s2879_s20, %s16_s20   ;;  %s2836_s19 = sphi %s2877_s19, %s3977_s19   ;;  %s2832_s18 = sphi %s2875_s18, %s3976_s18  }
   0x3   : > { %p37_p1 = scmp.ge.s32.totalorder %s35_s21, 49  ;;  %p250_p2 = scmp.lt.s32.totalorder %s2840_s20, 50 }
   0x5   : > { %s3979_s21 = smov (%p37_p1, %s35_s21), 0  ;;  %p251_p3 = pnand %p2420_p0, %p250_p2 }
   0x6   : > { %v2711_v0 = vld [vmem:[%s3971_s1] sm:$0xff] (!%p251_p3)   ;;  %v2842_v1 = vmov (!%p251_p3), 0   ;;  %v2712_v2 = vld [vmem:[%s3971_s1 + $0x8] sm:$0xff] (!%p251_p3)   ;;  %v2713_v3 = vld [vmem:[%s3971_s1 + $0x10] sm:$0xff] (!%p251_p3)   ;;  %s2421_s28 = sshll.u32 (!%p251_p3), %s2832_s18, 6  ;;  %vm916_vm0 = vcmask (!%p251_p3), 154624  }
   0x7   : > { %254 = sbr.rel (%p251_p3) target bundleno = 475 (0x1db), region = 32  ;;  %1020 = vmatprep.subr.bf16.mxu0 (!%p251_p3), %v2842_v1  ;;  %2664 = vmatprep.subr.bf16.mxu1 (!%p251_p3), %v2842_v1  ;;  %p311_p4 = scmp.lt.s32.totalorder (!%p251_p3), %s2421_s28, 3135  ;;  %v2714_v4 = vld [vmem:[%s3971_s1 + $0x18] sm:$0xff] (!%p251_p3)   ;;  %v2715_v5 = vld [vmem:[%s3971_s1 + $0x20] sm:$0xff] (!%p251_p3)   ;;  %v2716_v7 = vld [vmem:[%s3971_s1 + $0x28] sm:$0xff] (!%p251_p3)   ;;  %vm1013_vm1 = vcmask (!%p251_p3), 1040384  }
   0x8   : > { %1021 = vmatpush1.bf16.msra.mxu0 (!%p251_p3), %v2711_v0  ;;  %2674 = vmatpush1.bf16.msra.mxu1 (!%p251_p3), %v2711_v0  ;;  %v2717_v8 = vld [vmem:[%s3971_s1 + $0x30] sm:$0xff] (!%p251_p3)   ;;  %v2718_v10 = vld [vmem:[%s3971_s1 + $0x38] sm:$0xff] (!%p251_p3)   ;;  %vm1014_vm2 = vcmask (!%p251_p3), 1041408   ;;  %v2843_v11 = vmov (!%p251_p3), 65535   ;;  %v2719_v13 = vld [vmem:[%s3971_s1 + $0x40] sm:$0xff] (!%p251_p3)   ;;  %vm359_vm3 = vcmask (!%p251_p3), 523264  }
   0x9   : > { %1022 = vmatprep.subr.bf16.mxu0 (!%p251_p3), %v2842_v1  ;;  %2665 = vmatprep.subr.bf16.mxu1 (!%p251_p3), %v2842_v1  ;;  %v1015_v12 = vsel (!%p251_p3), %vm1013_vm1, 4294967295, %v2843_v11  ;;  %v2720_v14 = vld [vmem:[%s3971_s1 + $0x48] ss:$0 sps:$4 sm:$0x33] (!%p251_p3)   ;;  %v2844_v17 = vmov (!%p251_p3), 0.0   ;;  %vm1832_vm4 = vcmask (!%p251_p3), 519168  }
   0xa   : > { %v1016_v15 = vsel (!%p251_p3), %vm1014_vm2, %v1015_v12, 0  ;;  %360 = vst.msk [vmem:[#allocation2] sm:$0xff] (!%p251_p3), %vm359_vm3, %v2844_v17  ;;  %361 = vst.msk [vmem:[#allocation2 + $0x8] sm:$0xff] (!%p251_p3), %vm359_vm3, %v2844_v17  ;;  %p342_p5 = scmp.lt.s32.totalorder (!%p251_p3), %s2832_s18, 48  ;;  %vm2030_vm5 = vcmask (!%p251_p3), 516096  }
   0xb   : > { %v2956_v16 = vand.u32 (!%p251_p3), %v2720_v14, %v1016_v15  ;;  %362 = vst.msk [vmem:[#allocation2 + $0x10] sm:$0xff] (!%p251_p3), %vm359_vm3, %v2844_v17  ;;  %363 = vst.msk [vmem:[#allocation2 + $0x18] sm:$0xff] (!%p251_p3), %vm359_vm3, %v2844_v17 }
   0xc   : > { %1023 = vmatpush1.bf16.msra.mxu0 (!%p251_p3), %v2712_v2  ;;  %2675 = vmatpush1.bf16.msra.mxu1 (!%p251_p3), %v2712_v2  ;;  %364 = vst.msk [vmem:[#allocation2 + $0x20] sm:$0xff] (!%p251_p3), %vm359_vm3, %v2844_v17  ;;  %365 = vst.msk [vmem:[#allocation2 + $0x28] sm:$0xff] (!%p251_p3), %vm359_vm3, %v2844_v17 }
   0xd   : > { %1024 = vmatprep.subr.bf16.mxu0 (!%p251_p3), %v2842_v1  ;;  %2666 = vmatprep.subr.bf16.mxu1 (!%p251_p3), %v2842_v1  ;;  %366 = vst.msk [vmem:[#allocation2 + $0x30] sm:$0xff] (!%p251_p3), %vm359_vm3, %v2844_v17  ;;  %367 = vst.msk [vmem:[#allocation2 + $0x38] sm:$0xff] (!%p251_p3), %vm359_vm3, %v2844_v17 }
   0xe   : > { %s3981_s28 = smov (!%p311_p4, %s2421_s28), 3135  ;;  %368 = vst.msk [vmem:[#allocation2 + $0x40] sm:$0xff] %vm359_vm3, %v2844_v17  ;;  %369 = vst.msk [vmem:[#allocation2 + $0x48] sm:$0xff] %vm359_vm3, %v2844_v17  ;;  %s3983_s18 = smov (!%p342_p5, %s2832_s18), 48 }
   0xf   : > { %s2599_s6 = sshll.u32 %s3981_s28, 3  ;;  %370 = vst.msk [vmem:[#allocation2 + $0x50] sm:$0xff] %vm359_vm3, %v2844_v17  ;;  %371 = vst.msk [vmem:[#allocation2 + $0x58] sm:$0xff] %vm359_vm3, %v2844_v17  ;;  %s2425_s29 = sshll.u32 %s3981_s28, 2 }
  0x10   : > { %1025 = vmatpush1.bf16.msra.mxu0 %v2713_v3  ;;  %2676 = vmatpush1.bf16.msra.mxu1 %v2713_v3  ;;  %s2922_s9 = scalar_lea.vmem %s3970_s0, %s2599_s6  ;;  %372 = vst.msk [vmem:[#allocation2 + $0x60] sm:$0xff] %vm359_vm3, %v2844_v17  ;;  %373 = vst.msk [vmem:[#allocation2 + $0x68] sm:$0xff] %vm359_vm3, %v2844_v17  ;;  %s3203_s6 = scalar_lea.vmem %s3973_s3, %s2425_s29 }
  0x11   : > { %1026 = vmatprep.subr.bf16.mxu0 %v2842_v1  ;;  %2667 = vmatprep.subr.bf16.mxu1 %v2842_v1  ;;  %v2723_v6 = vld [vmem:[%s2922_s9 + $0x4] ss:$8 sps:$4 sm:$0xff]   ;;  %374 = vst.msk [vmem:[#allocation2 + $0x70] sm:$0xff] %vm359_vm3, %v2844_v17  ;;  %375 = vst.msk [vmem:[#allocation2 + $0x78] sm:$0xff] %vm359_vm3, %v2844_v17  ;;  %v2721_v18 = vld [vmem:[%s2922_s9] ss:$8 sps:$4 sm:$0xff]   ;;  %s347_s11 = scalar_lea.vmem %s3974_s4, %s3983_s18  ;;  %s353_s14 = scalar_lea.vmem %s3975_s5, %s3983_s18 }
  0x12   : > { %2500 = vmatprep.mubr.msk.bf16.mxu0 %vm916_vm0, %v2723_v6  ;;  %v2747_v9 = vld [vmem:[%s2922_s9 + $0x104] ss:$8 sps:$4 sm:$0xff]   ;;  %376 = vst.msk [vmem:[#allocation2 + $0x80] sm:$0xff] %vm359_vm3, %v2844_v17  ;;  %377 = vst.msk [vmem:[#allocation2 + $0x88] sm:$0xff] %vm359_vm3, %v2844_v17  ;;  %v2724_v19 = vld [vmem:[%s2922_s9 + $0x14] ss:$8 sps:$4 sm:$0xff]  }
  0x13   : > { %2516 = vmatprep.mubr.msk.bf16.mxu1 %vm916_vm0, %v2747_v9  ;;  %378 = vst.msk [vmem:[#allocation2 + $0x90] sm:$0xff] %vm359_vm3, %v2844_v17  ;;  %379 = vst.msk [vmem:[#allocation2 + $0x98] sm:$0xff] %vm359_vm3, %v2844_v17  ;;  %v2745_v20 = vld [vmem:[%s2922_s9 + $0x100] ss:$8 sps:$4 sm:$0xff]   ;;  %v2751_v21 = vld [vmem:[%s2922_s9 + $0x114] ss:$8 sps:$4 sm:$0xff]  }
  0x14   : > { %1027 = vmatpush1.bf16.msra.mxu0 %v2714_v4  ;;  %2677 = vmatpush1.bf16.msra.mxu1 %v2714_v4  ;;  %380 = vst.msk [vmem:[#allocation2 + $0xa0] sm:$0xff] %vm359_vm3, %v2844_v17  ;;  %381 = vst.msk [vmem:[#allocation2 + $0xa8] sm:$0xff] %vm359_vm3, %v2844_v17  ;;  %v2726_v22 = vld [vmem:[%s2922_s9 + $0x10] ss:$8 sps:$4 sm:$0xff]   ;;  %v2727_v23 = vld [vmem:[%s2922_s9 + $0x24] ss:$8 sps:$4 sm:$0xff]  }
  0x15   : > { %1028 = vmatprep.subr.bf16.mxu0 %v2842_v1  ;;  %2668 = vmatprep.subr.bf16.mxu1 %v2842_v1  ;;  %382 = vst.msk [vmem:[#allocation2 + $0xb0] sm:$0xff] %vm359_vm3, %v2844_v17  ;;  %383 = vst.msk [vmem:[#allocation2 + $0xb8] sm:$0xff] %vm359_vm3, %v2844_v17  ;;  %v2753_v24 = vld [vmem:[%s2922_s9 + $0x110] ss:$8 sps:$4 sm:$0xff]   ;;  %v2757_v25 = vld [vmem:[%s2922_s9 + $0x124] ss:$8 sps:$4 sm:$0xff]  }
  0x16   : > { %384 = vst.msk [vmem:[#allocation2 + $0xc0] sm:$0xff] %vm359_vm3, %v2844_v17  ;;  %385 = vst.msk [vmem:[#allocation2 + $0xc8] sm:$0xff] %vm359_vm3, %v2844_v17  ;;  %v2729_v26 = vld [vmem:[%s2922_s9 + $0x20] ss:$8 sps:$4 sm:$0xff]   ;;  %v2730_v27 = vld [vmem:[%s2922_s9 + $0x34] ss:$8 sps:$4 sm:$0xff]  }
  0x17   : > { %386 = vst.msk [vmem:[#allocation2 + $0xd0] sm:$0xff] %vm359_vm3, %v2844_v17  ;;  %387 = vst.msk [vmem:[#allocation2 + $0xd8] sm:$0xff] %vm359_vm3, %v2844_v17  ;;  %v2759_v28 = vld [vmem:[%s2922_s9 + $0x120] ss:$8 sps:$4 sm:$0xff]   ;;  %v2763_v29 = vld [vmem:[%s2922_s9 + $0x134] ss:$8 sps:$4 sm:$0xff]  }
  0x18   : > { %1029 = vmatpush1.bf16.msra.mxu0 %v2715_v5  ;;  %2678 = vmatpush1.bf16.msra.mxu1 %v2715_v5  ;;  %388 = vst.msk [vmem:[#allocation2 + $0xe0] sm:$0xff] %vm359_vm3, %v2844_v17  ;;  %389 = vst.msk [vmem:[#allocation2 + $0xe8] sm:$0xff] %vm359_vm3, %v2844_v17  ;;  %v2732_v30 = vld [vmem:[%s2922_s9 + $0x30] ss:$8 sps:$4 sm:$0xff]   ;;  %v2733_v32 = vld [vmem:[%s2922_s9 + $0x44] ss:$8 sps:$4 sm:$0xff]  }
  0x19   : > { %1030 = vmatprep.subr.bf16.mxu0 %v2842_v1  ;;  %2669 = vmatprep.subr.bf16.mxu1 %v2842_v1  ;;  %390 = vst.msk [vmem:[#allocation2 + $0xf0] sm:$0xff] %vm359_vm3, %v2844_v17  ;;  %391 = vst.msk [vmem:[#allocation2 + $0xf8] sm:$0xff] %vm359_vm3, %v2844_v17  ;;  %v2765_v31 = vld [vmem:[%s2922_s9 + $0x130] ss:$8 sps:$4 sm:$0xff]   ;;  %v2769_v33 = vld [vmem:[%s2922_s9 + $0x144] ss:$8 sps:$4 sm:$0xff]  }
  0x1a   : > { %392 = vst.msk [vmem:[#allocation2 + $0x100] sm:$0xff] %vm359_vm3, %v2844_v17  ;;  %393 = vst.msk [vmem:[#allocation2 + $0x108] sm:$0xff] %vm359_vm3, %v2844_v17  ;;  %v2735_v34 = vld [vmem:[%s2922_s9 + $0x40] ss:$8 sps:$4 sm:$0xff]   ;;  %v2736_v36 = vld [vmem:[%s2922_s9 + $0x54] ss:$8 sps:$4 sm:$0xff]  }
  0x1b   : > { %394 = vst.msk [vmem:[#allocation2 + $0x110] sm:$0xff] %vm359_vm3, %v2844_v17  ;;  %395 = vst.msk [vmem:[#allocation2 + $0x118] sm:$0xff] %vm359_vm3, %v2844_v17  ;;  %v2771_v35 = vld [vmem:[%s2922_s9 + $0x140] ss:$8 sps:$4 sm:$0xff]   ;;  %v2775_v37 = vld [vmem:[%s2922_s9 + $0x154] ss:$8 sps:$4 sm:$0xff]  }
  0x1c   : > { %1031 = vmatpush1.bf16.msra.mxu0 %v2716_v7  ;;  %2679 = vmatpush1.bf16.msra.mxu1 %v2716_v7  ;;  %396 = vst.msk [vmem:[#allocation2 + $0x120] sm:$0xff] %vm359_vm3, %v2844_v17  ;;  %397 = vst.msk [vmem:[#allocation2 + $0x128] sm:$0xff] %vm359_vm3, %v2844_v17  ;;  %v2738_v38 = vld [vmem:[%s2922_s9 + $0x50] ss:$8 sps:$4 sm:$0xff]   ;;  %v2739_v40 = vld [vmem:[%s2922_s9 + $0x64] ss:$8 sps:$4 sm:$0xff]  }
  0x1d   : > { %1032 = vmatprep.subr.bf16.mxu0 %v2842_v1  ;;  %2670 = vmatprep.subr.bf16.mxu1 %v2842_v1  ;;  %398 = vst.msk [vmem:[#allocation2 + $0x130] sm:$0xff] %vm359_vm3, %v2844_v17  ;;  %399 = vst.msk [vmem:[#allocation2 + $0x138] sm:$0xff] %vm359_vm3, %v2844_v17  ;;  %v2777_v39 = vld [vmem:[%s2922_s9 + $0x150] ss:$8 sps:$4 sm:$0xff]   ;;  %v2781_v41 = vld [vmem:[%s2922_s9 + $0x164] ss:$8 sps:$4 sm:$0xff]  }
  0x1e   : > { %400 = vst.msk [vmem:[#allocation2 + $0x140] sm:$0xff] %vm359_vm3, %v2844_v17  ;;  %401 = vst.msk [vmem:[#allocation2 + $0x148] sm:$0xff] %vm359_vm3, %v2844_v17  ;;  %v2741_v42 = vld [vmem:[%s2922_s9 + $0x60] ss:$8 sps:$4 sm:$0xff]   ;;  %v2742_v44 = vld [vmem:[%s2922_s9 + $0x74] ss:$8 sps:$4 sm:$0xff]  }
  0x1f   : > { %402 = vst.msk [vmem:[#allocation2 + $0x150] sm:$0xff] %vm359_vm3, %v2844_v17  ;;  %403 = vst.msk [vmem:[#allocation2 + $0x158] sm:$0xff] %vm359_vm3, %v2844_v17  ;;  %v2783_v43 = vld [vmem:[%s2922_s9 + $0x160] ss:$8 sps:$4 sm:$0xff]   ;;  %v2787_v45 = vld [vmem:[%s2922_s9 + $0x174] ss:$8 sps:$4 sm:$0xff]  }
  0x20   : > { %1033 = vmatpush1.bf16.msra.mxu0 %v2717_v8  ;;  %2680 = vmatpush1.bf16.msra.mxu1 %v2717_v8  ;;  %404 = vst.msk [vmem:[#allocation2 + $0x160] sm:$0xff] %vm359_vm3, %v2844_v17  ;;  %405 = vst.msk [vmem:[#allocation2 + $0x168] sm:$0xff] %vm359_vm3, %v2844_v17  ;;  %v2744_v46 = vld [vmem:[%s2922_s9 + $0x70] ss:$8 sps:$4 sm:$0xff]   ;;  %v2748_v48 = vld [vmem:[%s2922_s9 + $0x84] ss:$8 sps:$4 sm:$0xff]  }
  0x21   : > { %1034 = vmatprep.subr.bf16.mxu0 %v2842_v1  ;;  %2671 = vmatprep.subr.bf16.mxu1 %v2842_v1  ;;  %406 = vst.msk [vmem:[#allocation2 + $0x170] sm:$0xff] %vm359_vm3, %v2844_v17  ;;  %407 = vst.msk [vmem:[#allocation2 + $0x178] sm:$0xff] %vm359_vm3, %v2844_v17  ;;  %v2789_v47 = vld [vmem:[%s2922_s9 + $0x170] ss:$8 sps:$4 sm:$0xff]   ;;  %v2793_v49 = vld [vmem:[%s2922_s9 + $0x184] ss:$8 sps:$4 sm:$0xff]  }
  0x22   : > { %408 = vst.msk [vmem:[#allocation2 + $0x180] sm:$0xff] %vm359_vm3, %v2844_v17  ;;  %409 = vst.msk [vmem:[#allocation2 + $0x188] sm:$0xff] %vm359_vm3, %v2844_v17  ;;  %v2750_v50 = vld [vmem:[%s2922_s9 + $0x80] ss:$8 sps:$4 sm:$0xff]   ;;  %v2754_v52 = vld [vmem:[%s2922_s9 + $0x94] ss:$8 sps:$4 sm:$0xff]  }
  0x23   : > { %410 = vst.msk [vmem:[#allocation2 + $0x190] sm:$0xff] %vm359_vm3, %v2844_v17  ;;  %411 = vst.msk [vmem:[#allocation2 + $0x198] sm:$0xff] %vm359_vm3, %v2844_v17  ;;  %v2795_v51 = vld [vmem:[%s2922_s9 + $0x180] ss:$8 sps:$4 sm:$0xff]   ;;  %v2796_v53 = vld [vmem:[%s2922_s9 + $0x194] ss:$8 sps:$4 sm:$0xff]  }
  0x24   : > { %1035 = vmatpush1.bf16.msra.mxu0 %v2718_v10  ;;  %2681 = vmatpush1.bf16.msra.mxu1 %v2718_v10  ;;  %412 = vst.msk [vmem:[#allocation2 + $0x1a0] sm:$0xff] %vm359_vm3, %v2844_v17  ;;  %413 = vst.msk [vmem:[#allocation2 + $0x1a8] sm:$0xff] %vm359_vm3, %v2844_v17  ;;  %v2756_v54 = vld [vmem:[%s2922_s9 + $0x90] ss:$8 sps:$4 sm:$0xff]   ;;  %v2760_v56 = vld [vmem:[%s2922_s9 + $0xa4] ss:$8 sps:$4 sm:$0xff]  }
  0x25   : > { %1036 = vmatprep.subr.bf16.mxu0 %v2842_v1  ;;  %2672 = vmatprep.subr.bf16.mxu1 %v2842_v1  ;;  %414 = vst.msk [vmem:[#allocation2 + $0x1b0] sm:$0xff] %vm359_vm3, %v2844_v17  ;;  %415 = vst.msk [vmem:[#allocation2 + $0x1b8] sm:$0xff] %vm359_vm3, %v2844_v17  ;;  %v2798_v55 = vld [vmem:[%s2922_s9 + $0x190] ss:$8 sps:$4 sm:$0xff]   ;;  %v2799_v57 = vld [vmem:[%s2922_s9 + $0x1a4] ss:$8 sps:$4 sm:$0xff]  }
  0x26   : > { %416 = vst.msk [vmem:[#allocation2 + $0x1c0] sm:$0xff] %vm359_vm3, %v2844_v17  ;;  %417 = vst.msk [vmem:[#allocation2 + $0x1c8] sm:$0xff] %vm359_vm3, %v2844_v17  ;;  %v2762_v58 = vld [vmem:[%s2922_s9 + $0xa0] ss:$8 sps:$4 sm:$0xff]   ;;  %v2766_v60 = vld [vmem:[%s2922_s9 + $0xb4] ss:$8 sps:$4 sm:$0xff]  }
  0x27   : > { %418 = vst.msk [vmem:[#allocation2 + $0x1d0] sm:$0xff] %vm359_vm3, %v2844_v17  ;;  %419 = vst.msk [vmem:[#allocation2 + $0x1d8] sm:$0xff] %vm359_vm3, %v2844_v17  ;;  %v2801_v59 = vld [vmem:[%s2922_s9 + $0x1a0] ss:$8 sps:$4 sm:$0xff]   ;;  %v2802_v61 = vld [vmem:[%s2922_s9 + $0x1b4] ss:$8 sps:$4 sm:$0xff]  }
  0x28   : > { %1037 = vmatpush1.bf16.msra.mxu0 %v2719_v13  ;;  %2682 = vmatpush1.bf16.msra.mxu1 %v2719_v13  ;;  %420 = vst.msk [vmem:[#allocation2 + $0x1e0] sm:$0xff] %vm359_vm3, %v2844_v17  ;;  %421 = vst.msk [vmem:[#allocation2 + $0x1e8] sm:$0xff] %vm359_vm3, %v2844_v17  ;;  %v2768_v62 = vld [vmem:[%s2922_s9 + $0xb0] ss:$8 sps:$4 sm:$0xff]   ;;  %v2772_v0 = vld [vmem:[%s2922_s9 + $0xc4] ss:$8 sps:$4 sm:$0xff]  }
  0x29   : > { %1038 = vmatprep.subr.bf16.mxu0 %v2842_v1  ;;  %2673 = vmatprep.subr.bf16.mxu1 %v2842_v1  ;;  %422 = vst.msk [vmem:[#allocation2 + $0x1f0] sm:$0xff] %vm359_vm3, %v2844_v17  ;;  %423 = vst.msk [vmem:[#allocation2 + $0x1f8] sm:$0xff] %vm359_vm3, %v2844_v17  ;;  %v2804_v63 = vld [vmem:[%s2922_s9 + $0x1b0] ss:$8 sps:$4 sm:$0xff]   ;;  %v2805_v1 = vld [vmem:[%s2922_s9 + $0x1c4] ss:$8 sps:$4 sm:$0xff]  }
  0x2a   : > { %v2774_v2 = vld [vmem:[%s2922_s9 + $0xc0] ss:$8 sps:$4 sm:$0xff]   ;;  %v2778_v4 = vld [vmem:[%s2922_s9 + $0xd4] ss:$8 sps:$4 sm:$0xff]   ;;  %v2780_v6 = vld [vmem:[%s2922_s9 + $0xd0] ss:$8 sps:$4 sm:$0xff]  }
  0x2b   : > { %v2807_v3 = vld [vmem:[%s2922_s9 + $0x1c0] ss:$8 sps:$4 sm:$0xff]   ;;  %v2808_v5 = vld [vmem:[%s2922_s9 + $0x1d4] ss:$8 sps:$4 sm:$0xff]   ;;  %v2810_v7 = vld [vmem:[%s2922_s9 + $0x1d0] ss:$8 sps:$4 sm:$0xff]  }
  0x2c   : > { %1039 = vmatpush1.bf16.msra.mxu0 %v2956_v16  ;;  %2683 = vmatpush1.bf16.msra.mxu1 %v2956_v16  ;;  %v2784_v8 = vld [vmem:[%s2922_s9 + $0xe4] ss:$8 sps:$4 sm:$0xff]   ;;  %v2786_v10 = vld [vmem:[%s2922_s9 + $0xe0] ss:$8 sps:$4 sm:$0xff]   ;;  %v2790_v12 = vld [vmem:[%s2922_s9 + $0xf4] ss:$8 sps:$4 sm:$0xff]  }
  0x2d   : > { %v2811_v9 = vld [vmem:[%s2922_s9 + $0x1e4] ss:$8 sps:$4 sm:$0xff]   ;;  %v2813_v11 = vld [vmem:[%s2922_s9 + $0x1e0] ss:$8 sps:$4 sm:$0xff]   ;;  %v2814_v13 = vld [vmem:[%s2922_s9 + $0x1f4] ss:$8 sps:$4 sm:$0xff]  }
  0x2e   : > { %v2792_v14 = vld [vmem:[%s2922_s9 + $0xf0] ss:$8 sps:$4 sm:$0xff]   ;;  %v424_v16 = vld [vmem:[#allocation2] sm:$0xff] }
  0x2f   : > { %1053 = vmatmul.mubr.bf16.vlgmr.msra.gmra.mrb[0].mxu0 %v2721_v18  ;;  %1181 = vmatmul.mubr.bf16.vlgmr.msra.gmra.mrb[0].mxu1 %v2745_v20  ;;  %v2816_v15 = vld [vmem:[%s2922_s9 + $0x1f0] ss:$8 sps:$4 sm:$0xff]   ;;  %v456_v17 = vld [vmem:[#allocation2 + $0x100] sm:$0xff] }
  0x30   : > { %2501 = vmatprep.mubr.msk.bf16.mxu0 %vm916_vm0, %v2724_v19  ;;  %2517 = vmatprep.mubr.msk.bf16.mxu1 %vm916_vm0, %v2751_v21  ;;  %v425_v19 = vld [vmem:[#allocation2 + $0x8] sm:$0xff] }
  0x31   : > { %v457_v21 = vld [vmem:[#allocation2 + $0x108] sm:$0xff] }
  0x37   : > { %1061 = vmatmul.mubr.bf16.gmra.mrb[4].mxu0 %v2726_v22  ;;  %1189 = vmatmul.mubr.bf16.gmra.mrb[4].mxu1 %v2753_v24 }
  0x38   : > { %2502 = vmatprep.mubr.msk.bf16.mxu0 %vm916_vm0, %v2727_v23  ;;  %2518 = vmatprep.mubr.msk.bf16.mxu1 %vm916_vm0, %v2757_v25 }
  0x3f   : > { %1069 = vmatmul.mubr.bf16.gmra.mrb[8].mxu0 %v2729_v26  ;;  %1197 = vmatmul.mubr.bf16.gmra.mrb[8].mxu1 %v2759_v28 }
  0x40   : > { %2503 = vmatprep.mubr.msk.bf16.mxu0 %vm916_vm0, %v2730_v27  ;;  %2519 = vmatprep.mubr.msk.bf16.mxu1 %vm916_vm0, %v2763_v29 }
  0x47   : > { %1077 = vmatmul.mubr.bf16.gmra.mrb[12].mxu0 %v2732_v30  ;;  %1205 = vmatmul.mubr.bf16.gmra.mrb[12].mxu1 %v2765_v31 }
  0x48   : > { %2504 = vmatprep.mubr.msk.bf16.mxu0 %vm916_vm0, %v2733_v32  ;;  %2520 = vmatprep.mubr.msk.bf16.mxu1 %vm916_vm0, %v2769_v33  ;;  %v426_v32 = vld [vmem:[#allocation2 + $0x10] sm:$0xff] }
  0x49   : > { %v458_v33 = vld [vmem:[#allocation2 + $0x110] sm:$0xff] }
  0x4f   : > { %1085 = vmatmul.mubr.bf16.gmra.mrb[16].mxu0 %v2735_v34  ;;  %1213 = vmatmul.mubr.bf16.gmra.mrb[16].mxu1 %v2771_v35  ;;  %v3189_v34 = vld [vmem:[%s3972_s2] ss:$0 sm:$0xff] }
  0x50   : > { %2505 = vmatprep.mubr.msk.bf16.mxu0 %vm916_vm0, %v2736_v36  ;;  %2521 = vmatprep.mubr.msk.bf16.mxu1 %vm916_vm0, %v2775_v37  ;;  %v427_v36 = vld [vmem:[#allocation2 + $0x18] sm:$0xff] }
  0x57   : > { %1093 = vmatmul.mubr.bf16.gmra.mrb[20].mxu0 %v2738_v38  ;;  %1221 = vmatmul.mubr.bf16.gmra.mrb[20].mxu1 %v2777_v39  ;;  %v459_v38 = vld [vmem:[#allocation2 + $0x118] sm:$0xff] }
  0x58   : > { %2506 = vmatprep.mubr.msk.bf16.mxu0 %vm916_vm0, %v2739_v40  ;;  %2522 = vmatprep.mubr.msk.bf16.mxu1 %vm916_vm0, %v2781_v41 }
  0x5f   : > { %1101 = vmatmul.mubr.bf16.gmra.mrb[24].mxu0 %v2741_v42  ;;  %1229 = vmatmul.mubr.bf16.gmra.mrb[24].mxu1 %v2783_v43 }
  0x60   : > { %2507 = vmatprep.mubr.msk.bf16.mxu0 %vm916_vm0, %v2742_v44  ;;  %2523 = vmatprep.mubr.msk.bf16.mxu1 %vm916_vm0, %v2787_v45 }
  0x67   : > { %1109 = vmatmul.mubr.bf16.gmra.mrb[28].mxu0 %v2744_v46  ;;  %1237 = vmatmul.mubr.bf16.gmra.mrb[28].mxu1 %v2789_v47 }
  0x68   : > { %2508 = vmatprep.mubr.msk.bf16.mxu0 %vm916_vm0, %v2748_v48  ;;  %2524 = vmatprep.mubr.msk.bf16.mxu1 %vm916_vm0, %v2793_v49 }
  0x6f   : > { %1117 = vmatmul.mubr.bf16.gmra.mrb[32].mxu0 %v2750_v50  ;;  %1245 = vmatmul.mubr.bf16.gmra.mrb[32].mxu1 %v2795_v51 }
  0x70   : > { %2509 = vmatprep.mubr.msk.bf16.mxu0 %vm916_vm0, %v2754_v52  ;;  %2525 = vmatprep.mubr.msk.bf16.mxu1 %vm916_vm0, %v2796_v53 }
  0x77   : > { %1125 = vmatmul.mubr.bf16.gmra.mrb[36].mxu0 %v2756_v54  ;;  %1253 = vmatmul.mubr.bf16.gmra.mrb[36].mxu1 %v2798_v55 }
  0x78   : > { %2510 = vmatprep.mubr.msk.bf16.mxu0 %vm916_vm0, %v2760_v56  ;;  %2526 = vmatprep.mubr.msk.bf16.mxu1 %vm916_vm0, %v2799_v57  ;;  %v428_v57 = vld [vmem:[#allocation2 + $0x20] sm:$0xff] }
  0x7f   : > { %1133 = vmatmul.mubr.bf16.gmra.mrb[40].mxu0 %v2762_v58  ;;  %1261 = vmatmul.mubr.bf16.gmra.mrb[40].mxu1 %v2801_v59 }
  0x80   : > { %2511 = vmatprep.mubr.msk.bf16.mxu0 %vm916_vm0, %v2766_v60  ;;  %2527 = vmatprep.mubr.msk.bf16.mxu1 %vm916_vm0, %v2802_v61  ;;  %v460_v60 = vld [vmem:[#allocation2 + $0x120] sm:$0xff] }
  0x87   : > { %1141 = vmatmul.mubr.bf16.gmra.mrb[44].mxu0 %v2768_v62  ;;  %1269 = vmatmul.mubr.bf16.gmra.mrb[44].mxu1 %v2804_v63  ;;  %v429_v63 = vld [vmem:[#allocation2 + $0x28] sm:$0xff] }
  0x88   : > { %2512 = vmatprep.mubr.msk.bf16.mxu0 %vm916_vm0, %v2772_v0  ;;  %2528 = vmatprep.mubr.msk.bf16.mxu1 %vm916_vm0, %v2805_v1 }
  0x8f   : > { %1149 = vmatmul.mubr.bf16.gmra.mrb[48].mxu0 %v2774_v2  ;;  %1277 = vmatmul.mubr.bf16.gmra.mrb[48].mxu1 %v2807_v3 }
  0x90   : > { %2513 = vmatprep.mubr.msk.bf16.mxu0 %vm916_vm0, %v2778_v4  ;;  %2529 = vmatprep.mubr.msk.bf16.mxu1 %vm916_vm0, %v2808_v5 }
  0x97   : > { %1157 = vmatmul.mubr.bf16.gmra.mrb[52].mxu0 %v2780_v6  ;;  %1285 = vmatmul.mubr.bf16.gmra.mrb[52].mxu1 %v2810_v7  ;;  %v461_v6 = vld [vmem:[#allocation2 + $0x128] sm:$0xff] }
  0x98   : > { %2514 = vmatprep.mubr.msk.bf16.mxu0 %vm916_vm0, %v2784_v8  ;;  %2530 = vmatprep.mubr.msk.bf16.mxu1 %vm916_vm0, %v2811_v9 }
  0x9f   : > { %1165 = vmatmul.mubr.bf16.gmra.mrb[56].mxu0 %v2786_v10  ;;  %1293 = vmatmul.mubr.bf16.gmra.mrb[56].mxu1 %v2813_v11 }
  0xa0   : > { %2515 = vmatprep.mubr.msk.bf16.mxu0 %vm916_vm0, %v2790_v12  ;;  %2531 = vmatprep.mubr.msk.bf16.mxu1 %vm916_vm0, %v2814_v13 }
  0xa7   : > { %1173 = vmatmul.mubr.bf16.gmra.mrb[60].mxu0 %v2792_v14  ;;  %1301 = vmatmul.mubr.bf16.gmra.mrb[60].mxu1 %v2816_v15 }
 0x102   : > { %v1054_v18 = vpop.f32.mrb[0].mxu0  ;;  %v1182_v20 = vpop.f32.mrb[0].mxu1 }
 0x103   : > { %v1309_v22 = vadd.f32 %v1054_v18, %v424_v16  ;;  %v1056_v23 = vpop.f32.mrb[1].mxu0  ;;  %v1341_v24 = vadd.f32 %v1182_v20, %v456_v17  ;;  %v1184_v25 = vpop.f32.mrb[1].mxu1 }
 0x104   : > { %v1057_v26 = vpop.f32.mrb[2].mxu0  ;;  %v1185_v27 = vpop.f32.mrb[2].mxu1  ;;  %v462_v23 = vld [vmem:[#allocation2 + $0x130] sm:$0xff] }
 0x105   : > { %1374 = vst.msk [vmem:[#allocation2] sm:$0xff] %vm359_vm3, %v1309_v22  ;;  %v1310_v28 = vadd.f32 %v1057_v26, %v425_v19  ;;  %v1059_v29 = vpop.f32.mrb[3].mxu0  ;;  %1406 = vst.msk [vmem:[#allocation2 + $0x100] sm:$0xff] %vm359_vm3, %v1341_v24  ;;  %v1342_v30 = vadd.f32 %v1185_v27, %v457_v21  ;;  %v1187_v31 = vpop.f32.mrb[3].mxu1  ;;  %v430_v21 = vld [vmem:[#allocation2 + $0x30] sm:$0xff]  ;;  %v431_v26 = vld [vmem:[#allocation2 + $0x38] sm:$0xff] }
 0x106   : > { %v463_v29 = vld [vmem:[#allocation2 + $0x138] sm:$0xff] }
 0x107   : > { %1375 = vst.msk [vmem:[#allocation2 + $0x8] sm:$0xff] %vm359_vm3, %v1310_v28  ;;  %1407 = vst.msk [vmem:[#allocation2 + $0x108] sm:$0xff] %vm359_vm3, %v1342_v30 }
 0x10a   : > { %v1062_v35 = vpop.f32.mrb[4].mxu0  ;;  %v1190_v37 = vpop.f32.mrb[4].mxu1 }
 0x10b   : > { %v1311_v39 = vadd.f32 %v1062_v35, %v426_v32  ;;  %v1064_v40 = vpop.f32.mrb[5].mxu0  ;;  %v1343_v41 = vadd.f32 %v1190_v37, %v458_v33  ;;  %v1192_v42 = vpop.f32.mrb[5].mxu1 }
 0x10c   : > { %v1441_v43 = vld [vmem:[#allocation2] sm:$0xff]  ;;  %v1065_v44 = vpop.f32.mrb[6].mxu0  ;;  %v1193_v46 = vpop.f32.mrb[6].mxu1 }
 0x10d   : > { %v1473_v45 = vld [vmem:[#allocation2 + $0x100] sm:$0xff]  ;;  %v3193_v47 = vadd.f32 %v3189_v34, %v1441_v43  ;;  %1376 = vst.msk [vmem:[#allocation2 + $0x10] sm:$0xff] %vm359_vm3, %v1311_v39  ;;  %v1312_v48 = vadd.f32 %v1065_v44, %v427_v36  ;;  %v1067_v49 = vpop.f32.mrb[7].mxu0  ;;  %1408 = vst.msk [vmem:[#allocation2 + $0x110] sm:$0xff] %vm359_vm3, %v1343_v41  ;;  %v1344_v51 = vadd.f32 %v1193_v46, %v459_v38  ;;  %v1195_v52 = vpop.f32.mrb[7].mxu1 }
 0x10e   : > { %v3197_v50 = vadd.f32 %v3189_v34, %v1473_v45  ;;  %v1442_v53 = vld [vmem:[#allocation2 + $0x8] sm:$0xff]  ;;  %v432_v52 = vld [vmem:[#allocation2 + $0x40] sm:$0xff] }
 0x10f   : > { %v1474_v54 = vld [vmem:[#allocation2 + $0x108] sm:$0xff]  ;;  %v2600_v55 = vpack.c.bf16 %v3193_v47, %v3193_v47  ;;  %v3208_v56 = vadd.f32 %v3189_v34, %v1442_v53  ;;  %1377 = vst.msk [vmem:[#allocation2 + $0x18] sm:$0xff] %vm359_vm3, %v1312_v48  ;;  %1409 = vst.msk [vmem:[#allocation2 + $0x118] sm:$0xff] %vm359_vm3, %v1344_v51 }
 0x110   : > { %v2632_v58 = vpack.c.bf16 %v3197_v50, %v3197_v50  ;;  %v3215_v59 = vadd.f32 %v3189_v34, %v1474_v54  ;;  %v464_v54 = vld [vmem:[#allocation2 + $0x140] sm:$0xff] }
 0x111   : > { %1833 = vst.msk [vmem:[%s3203_s6] sm:$0xf] %vm1832_vm4, %v2600_v55  ;;  %v2601_v61 = vpack.c.bf16 %v3208_v56, %v3208_v56 }
 0x112   : > { %v1070_v62 = vpop.f32.mrb[8].mxu0  ;;  %1865 = vst.msk [vmem:[%s3203_s6 + $0x80] sm:$0xf] %vm1832_vm4, %v2632_v58  ;;  %v2633_v0 = vpack.c.bf16 %v3215_v59, %v3215_v59  ;;  %v1198_v1 = vpop.f32.mrb[8].mxu1  ;;  %v433_v58 = vld [vmem:[#allocation2 + $0x48] sm:$0xff] }
 0x113   : > { %1834 = vst.msk [vmem:[%s3203_s6 + $0x4] sm:$0xf] %vm1832_vm4, %v2601_v61  ;;  %v1313_v2 = vadd.f32 %v1070_v62, %v428_v57  ;;  %v1072_v3 = vpop.f32.mrb[9].mxu0  ;;  %v1345_v4 = vadd.f32 %v1198_v1, %v460_v60  ;;  %v1200_v5 = vpop.f32.mrb[9].mxu1  ;;  %v465_v62 = vld [vmem:[#allocation2 + $0x148] sm:$0xff] }
 0x114   : > { %v1443_v7 = vld [vmem:[#allocation2 + $0x10] sm:$0xff]  ;;  %v1073_v8 = vpop.f32.mrb[10].mxu0  ;;  %1866 = vst.msk [vmem:[%s3203_s6 + $0x84] sm:$0xf] %vm1832_vm4, %v2633_v0  ;;  %v1201_v10 = vpop.f32.mrb[10].mxu1 }
 0x115   : > { %v1475_v9 = vld [vmem:[#allocation2 + $0x110] sm:$0xff]  ;;  %v3230_v11 = vadd.f32 %v3189_v34, %v1443_v7  ;;  %1378 = vst.msk [vmem:[#allocation2 + $0x20] sm:$0xff] %vm359_vm3, %v1313_v2  ;;  %v1314_v12 = vadd.f32 %v1073_v8, %v429_v63  ;;  %v1075_v13 = vpop.f32.mrb[11].mxu0  ;;  %1410 = vst.msk [vmem:[#allocation2 + $0x120] sm:$0xff] %vm359_vm3, %v1345_v4  ;;  %v1203_v15 = vpop.f32.mrb[11].mxu1  ;;  %v1346_v17 = vadd.f32 %v1201_v10, %v461_v6 }
 0x116   : > { %v3234_v14 = vadd.f32 %v3189_v34, %v1475_v9  ;;  %v1444_v16 = vld [vmem:[#allocation2 + $0x18] sm:$0xff] }
 0x117   : > { %v2602_v18 = vpack.c.bf16 %v3230_v11, %v3230_v11  ;;  %v3240_v19 = vadd.f32 %v3189_v34, %v1444_v16  ;;  %1379 = vst.msk [vmem:[#allocation2 + $0x28] sm:$0xff] %vm359_vm3, %v1314_v12  ;;  %v1476_v20 = vld [vmem:[#allocation2 + $0x118] sm:$0xff]  ;;  %1411 = vst.msk [vmem:[#allocation2 + $0x128] sm:$0xff] %vm359_vm3, %v1346_v17 }
 0x118   : > { %v2634_v22 = vpack.c.bf16 %v3234_v14, %v3234_v14  ;;  %v3253_v27 = vadd.f32 %v3189_v34, %v1476_v20 }
 0x119   : > { %1835 = vst.msk [vmem:[%s3203_s6 + $0x8] sm:$0xf] %vm1832_vm4, %v2602_v18  ;;  %v2603_v24 = vpack.c.bf16 %v3240_v19, %v3240_v19 }
 0x11a   : > { %v1078_v25 = vpop.f32.mrb[12].mxu0  ;;  %1867 = vst.msk [vmem:[%s3203_s6 + $0x88] sm:$0xf] %vm1832_vm4, %v2634_v22  ;;  %v1206_v28 = vpop.f32.mrb[12].mxu1  ;;  %v2635_v37 = vpack.c.bf16 %v3253_v27, %v3253_v27 }
 0x11b   : > { %1836 = vst.msk [vmem:[%s3203_s6 + $0xc] sm:$0xf] %vm1832_vm4, %v2603_v24  ;;  %v1315_v30 = vadd.f32 %v1078_v25, %v430_v21  ;;  %v1080_v31 = vpop.f32.mrb[13].mxu0  ;;  %v1347_v32 = vadd.f32 %v1206_v28, %v462_v23  ;;  %v1208_v33 = vpop.f32.mrb[13].mxu1  ;;  %v434_v21 = vld [vmem:[#allocation2 + $0x50] sm:$0xff] }
 0x11c   : > { %v1445_v35 = vld [vmem:[#allocation2 + $0x20] sm:$0xff]  ;;  %v1081_v36 = vpop.f32.mrb[14].mxu0  ;;  %v1209_v39 = vpop.f32.mrb[14].mxu1  ;;  %1868 = vst.msk [vmem:[%s3203_s6 + $0x8c] sm:$0xf] %vm1832_vm4, %v2635_v37  ;;  %v466_v23 = vld [vmem:[#allocation2 + $0x150] sm:$0xff]  ;;  %v2033_v31 = vmul.f32 %v3208_v56, %v3208_v56  ;;  %v2032_v37 = vmul.f32 %v3193_v47, %v3193_v47 }
 0x11d   : > { %v1477_v38 = vld [vmem:[#allocation2 + $0x120] sm:$0xff]  ;;  %v3260_v40 = vadd.f32 %v3189_v34, %v1445_v35  ;;  %1380 = vst.msk [vmem:[#allocation2 + $0x30] sm:$0xff] %vm359_vm3, %v1315_v30  ;;  %v1316_v41 = vadd.f32 %v1081_v36, %v431_v26  ;;  %v1083_v42 = vpop.f32.mrb[15].mxu0  ;;  %1412 = vst.msk [vmem:[#allocation2 + $0x130] sm:$0xff] %vm359_vm3, %v1347_v32  ;;  %v1348_v44 = vadd.f32 %v1209_v39, %v463_v29  ;;  %v1211_v45 = vpop.f32.mrb[15].mxu1  ;;  %v435_v26 = vld [vmem:[#allocation2 + $0x58] sm:$0xff] }
 0x11e   : > { %v3264_v43 = vadd.f32 %v3189_v34, %v1477_v38  ;;  %v1446_v46 = vld [vmem:[#allocation2 + $0x28] sm:$0xff]  ;;  %v467_v30 = vld [vmem:[#allocation2 + $0x158] sm:$0xff]  ;;  %v1898_v38 = vsel %vm359_vm3, %v3208_v56, 0.0  ;;  %v2034_v39 = vmul.f32 %v3230_v11, %v3230_v11 }
 0x11f   : > { %v2604_v48 = vpack.c.bf16 %v3260_v40, %v3260_v40  ;;  %v3272_v49 = vadd.f32 %v3189_v34, %v1446_v46  ;;  %1381 = vst.msk [vmem:[#allocation2 + $0x38] sm:$0xff] %vm359_vm3, %v1316_v41  ;;  %v1478_v51 = vld [vmem:[#allocation2 + $0x128] sm:$0xff]  ;;  %1413 = vst.msk [vmem:[#allocation2 + $0x138] sm:$0xff] %vm359_vm3, %v1348_v44 }
 0x120   : > { %v2636_v53 = vpack.c.bf16 %v3264_v43, %v3264_v43  ;;  %v3285_v60 = vadd.f32 %v3189_v34, %v1478_v51 }
 0x121   : > { %1837 = vst.msk [vmem:[%s3203_s6 + $0x10] sm:$0xf] %vm1832_vm4, %v2604_v48  ;;  %v2605_v55 = vpack.c.bf16 %v3272_v49, %v3272_v49 }
 0x122   : > { %v1086_v57 = vpop.f32.mrb[16].mxu0  ;;  %1869 = vst.msk [vmem:[%s3203_s6 + $0x90] sm:$0xf] %vm1832_vm4, %v2636_v53  ;;  %v1214_v61 = vpop.f32.mrb[16].mxu1  ;;  %v2637_v5 = vpack.c.bf16 %v3285_v60, %v3285_v60 }
 0x123   : > { %1838 = vst.msk [vmem:[%s3203_s6 + $0x14] sm:$0xf] %vm1832_vm4, %v2605_v55  ;;  %v1317_v63 = vadd.f32 %v1086_v57, %v432_v52  ;;  %v1088_v0 = vpop.f32.mrb[17].mxu0  ;;  %v1349_v1 = vadd.f32 %v1214_v61, %v464_v54  ;;  %v1216_v2 = vpop.f32.mrb[17].mxu1  ;;  %v1897_v55 = vsel %vm359_vm3, %v3193_v47, 0.0  ;;  %v1900_v61 = vsel %vm359_vm3, %v3230_v11, 0.0 }
 0x124   : > { %v1447_v3 = vld [vmem:[#allocation2 + $0x30] sm:$0xff]  ;;  %v1089_v4 = vpop.f32.mrb[18].mxu0  ;;  %v1217_v7 = vpop.f32.mrb[18].mxu1  ;;  %1870 = vst.msk [vmem:[%s3203_s6 + $0x94] sm:$0xf] %vm1832_vm4, %v2637_v5  ;;  %v1899_v47 = vadd.f32 %v1898_v38, %v1897_v55  ;;  %v436_v2 = vld [vmem:[#allocation2 + $0x60] sm:$0xff] }
 0x125   : > { %v1479_v6 = vld [vmem:[#allocation2 + $0x130] sm:$0xff]  ;;  %v3292_v8 = vadd.f32 %v3189_v34, %v1447_v3  ;;  %1382 = vst.msk [vmem:[#allocation2 + $0x40] sm:$0xff] %vm359_vm3, %v1317_v63  ;;  %v1318_v9 = vadd.f32 %v1089_v4, %v433_v58  ;;  %v1091_v10 = vpop.f32.mrb[19].mxu0  ;;  %1414 = vst.msk [vmem:[#allocation2 + $0x140] sm:$0xff] %vm359_vm3, %v1349_v1  ;;  %v1350_v13 = vadd.f32 %v1217_v7, %v465_v62  ;;  %v1219_v15 = vpop.f32.mrb[19].mxu1  ;;  %v2097_v58 = vsel %vm359_vm3, %v2033_v31, 0.0 }
 0x126   : > { %v3296_v12 = vadd.f32 %v3189_v34, %v1479_v6  ;;  %v1448_v16 = vld [vmem:[#allocation2 + $0x38] sm:$0xff]  ;;  %v2035_v1 = vmul.f32 %v3240_v19, %v3240_v19  ;;  %v468_v3 = vld [vmem:[#allocation2 + $0x160] sm:$0xff]  ;;  %v2096_v4 = vsel %vm359_vm3, %v2032_v37, 0.0  ;;  %v2099_v5 = vsel %vm359_vm3, %v2034_v39, 0.0 }
 0x127   : > { %v2606_v17 = vpack.c.bf16 %v3292_v8, %v3292_v8  ;;  %v3304_v18 = vadd.f32 %v3189_v34, %v1448_v16  ;;  %1383 = vst.msk [vmem:[#allocation2 + $0x48] sm:$0xff] %vm359_vm3, %v1318_v9  ;;  %v1480_v20 = vld [vmem:[#allocation2 + $0x138] sm:$0xff]  ;;  %1415 = vst.msk [vmem:[#allocation2 + $0x148] sm:$0xff] %vm359_vm3, %v1350_v13  ;;  %v2098_v7 = vadd.f32 %v2097_v58, %v2096_v4  ;;  %v437_v13 = vld [vmem:[#allocation2 + $0x68] sm:$0xff] }
 0x128   : > { %v2638_v22 = vpack.c.bf16 %v3296_v12, %v3296_v12  ;;  %v3317_v28 = vadd.f32 %v3189_v34, %v1480_v20  ;;  %v1901_v9 = vadd.f32 %v1900_v61, %v1899_v47  ;;  %v1902_v20 = vsel %vm359_vm3, %v3240_v19, 0.0  ;;  %v438_v58 = vld [vmem:[#allocation2 + $0x70] sm:$0xff] }
 0x129   : > { %1839 = vst.msk [vmem:[%s3203_s6 + $0x18] sm:$0xf] %vm1832_vm4, %v2606_v17  ;;  %v2607_v24 = vpack.c.bf16 %v3304_v18, %v3304_v18  ;;  %v469_v17 = vld [vmem:[#allocation2 + $0x168] sm:$0xff] }
 0x12a   : > { %v1094_v25 = vpop.f32.mrb[20].mxu0  ;;  %1871 = vst.msk [vmem:[%s3203_s6 + $0x98] sm:$0xf] %vm1832_vm4, %v2638_v22  ;;  %v1222_v29 = vpop.f32.mrb[20].mxu1  ;;  %v2639_v44 = vpack.c.bf16 %v3317_v28, %v3317_v28 }
 0x12b   : > { %1840 = vst.msk [vmem:[%s3203_s6 + $0x1c] sm:$0xf] %vm1832_vm4, %v2607_v24  ;;  %v1319_v32 = vadd.f32 %v1094_v25, %v434_v21  ;;  %v1096_v33 = vpop.f32.mrb[21].mxu0  ;;  %v1351_v35 = vadd.f32 %v1222_v29, %v466_v23  ;;  %v1224_v36 = vpop.f32.mrb[21].mxu1  ;;  %v2036_v21 = vmul.f32 %v3260_v40, %v3260_v40  ;;  %v2101_v29 = vsel %vm359_vm3, %v2035_v1, 0.0 }
 0x12c   : > { %v1449_v41 = vld [vmem:[#allocation2 + $0x40] sm:$0xff]  ;;  %v1097_v42 = vpop.f32.mrb[22].mxu0  ;;  %v1225_v46 = vpop.f32.mrb[22].mxu1  ;;  %1872 = vst.msk [vmem:[%s3203_s6 + $0x9c] sm:$0xf] %vm1832_vm4, %v2639_v44 }
 0x12d   : > { %v1481_v45 = vld [vmem:[#allocation2 + $0x140] sm:$0xff]  ;;  %v3332_v48 = vadd.f32 %v3189_v34, %v1449_v41  ;;  %1384 = vst.msk [vmem:[#allocation2 + $0x50] sm:$0xff] %vm359_vm3, %v1319_v32  ;;  %v1320_v51 = vadd.f32 %v1097_v42, %v435_v26  ;;  %v1099_v52 = vpop.f32.mrb[23].mxu0  ;;  %1416 = vst.msk [vmem:[#allocation2 + $0x150] sm:$0xff] %vm359_vm3, %v1351_v35  ;;  %v1352_v53 = vadd.f32 %v1225_v46, %v467_v30  ;;  %v1227_v54 = vpop.f32.mrb[23].mxu1  ;;  %v1904_v30 = vsel %vm359_vm3, %v3260_v40, 0.0 }
 0x12e   : > { %v3336_v56 = vadd.f32 %v3189_v34, %v1481_v45  ;;  %v1450_v57 = vld [vmem:[#allocation2 + $0x48] sm:$0xff]  ;;  %v2100_v26 = vadd.f32 %v2099_v5, %v2098_v7  ;;  %v1903_v42 = vadd.f32 %v1902_v20, %v1901_v9  ;;  %v2103_v45 = vsel %vm359_vm3, %v2036_v21, 0.0  ;;  %v471_v5 = vld [vmem:[#allocation2 + $0x178] sm:$0xff] }
 0x12f   : > { %v2608_v62 = vpack.c.bf16 %v3332_v48, %v3332_v48  ;;  %v3349_v63 = vadd.f32 %v3189_v34, %v1450_v57  ;;  %1385 = vst.msk [vmem:[#allocation2 + $0x58] sm:$0xff] %vm359_vm3, %v1320_v51  ;;  %v1482_v0 = vld [vmem:[#allocation2 + $0x148] sm:$0xff]  ;;  %1417 = vst.msk [vmem:[#allocation2 + $0x158] sm:$0xff] %vm359_vm3, %v1352_v53  ;;  %v2037_v46 = vmul.f32 %v3272_v49, %v3272_v49 }
 0x130   : > { %v2640_v11 = vpack.c.bf16 %v3336_v56, %v3336_v56  ;;  %v3366_v15 = vadd.f32 %v3189_v34, %v1482_v0  ;;  %v2102_v54 = vadd.f32 %v2101_v29, %v2100_v26  ;;  %v1905_v55 = vadd.f32 %v1904_v30, %v1903_v42 }
 0x131   : > { %1841 = vst.msk [vmem:[%s3203_s6 + $0x20] sm:$0xf] %vm1832_vm4, %v2608_v62  ;;  %v2609_v6 = vpack.c.bf16 %v3349_v63, %v3349_v63  ;;  %v2038_v57 = vmul.f32 %v3292_v8, %v3292_v8  ;;  %v470_v62 = vld [vmem:[#allocation2 + $0x170] sm:$0xff]  ;;  %v1906_v0 = vsel %vm359_vm3, %v3272_v49, 0.0  ;;  %v1908_v49 = vsel %vm359_vm3, %v3292_v8, 0.0 }
 0x132   : > { %v1102_v10 = vpop.f32.mrb[24].mxu0  ;;  %1873 = vst.msk [vmem:[%s3203_s6 + $0xa0] sm:$0xf] %vm1832_vm4, %v2640_v11  ;;  %v1230_v16 = vpop.f32.mrb[24].mxu1  ;;  %v2641_v19 = vpack.c.bf16 %v3366_v15, %v3366_v15  ;;  %v2104_v1 = vadd.f32 %v2103_v45, %v2102_v54  ;;  %v439_v11 = vld [vmem:[#allocation2 + $0x78] sm:$0xff]  ;;  %v2039_v20 = vmul.f32 %v3304_v18, %v3304_v18  ;;  %v440_v45 = vld [vmem:[#allocation2 + $0x80] sm:$0xff] }
 0x133   : > { %1842 = vst.msk [vmem:[%s3203_s6 + $0x24] sm:$0xf] %vm1832_vm4, %v2609_v6  ;;  %v1321_v22 = vadd.f32 %v1102_v10, %v436_v2  ;;  %v1104_v23 = vpop.f32.mrb[25].mxu0  ;;  %v1353_v24 = vadd.f32 %v1230_v16, %v468_v3  ;;  %v1232_v25 = vpop.f32.mrb[25].mxu1  ;;  %v2105_v6 = vsel %vm359_vm3, %v2037_v46, 0.0  ;;  %v1907_v16 = vadd.f32 %v1906_v0, %v1905_v55  ;;  %v472_v46 = vld [vmem:[#allocation2 + $0x180] sm:$0xff] }
 0x134   : > { %v1451_v31 = vld [vmem:[#allocation2 + $0x50] sm:$0xff]  ;;  %v1105_v32 = vpop.f32.mrb[26].mxu0  ;;  %v1233_v35 = vpop.f32.mrb[26].mxu1  ;;  %1874 = vst.msk [vmem:[%s3203_s6 + $0xa4] sm:$0xf] %vm1832_vm4, %v2641_v19  ;;  %v2106_v19 = vadd.f32 %v2105_v6, %v2104_v1  ;;  %v473_v0 = vld [vmem:[#allocation2 + $0x188] sm:$0xff] }
 0x135   : > { %v1483_v33 = vld [vmem:[#allocation2 + $0x150] sm:$0xff]  ;;  %v3380_v36 = vadd.f32 %v3189_v34, %v1451_v31  ;;  %1386 = vst.msk [vmem:[#allocation2 + $0x60] sm:$0xff] %vm359_vm3, %v1321_v22  ;;  %v1322_v37 = vadd.f32 %v1105_v32, %v437_v13  ;;  %v1107_v38 = vpop.f32.mrb[27].mxu0  ;;  %1418 = vst.msk [vmem:[#allocation2 + $0x160] sm:$0xff] %vm359_vm3, %v1353_v24  ;;  %v1354_v40 = vadd.f32 %v1233_v35, %v469_v17  ;;  %v1235_v41 = vpop.f32.mrb[27].mxu1  ;;  %v2107_v17 = vsel %vm359_vm3, %v2038_v57, 0.0 }
 0x136   : > { %v3384_v39 = vadd.f32 %v3189_v34, %v1483_v33  ;;  %v1452_v44 = vld [vmem:[#allocation2 + $0x58] sm:$0xff]  ;;  %v1909_v33 = vadd.f32 %v1908_v49, %v1907_v16  ;;  %v2040_v38 = vmul.f32 %v3332_v48, %v3332_v48 }
 0x137   : > { %v2610_v51 = vpack.c.bf16 %v3380_v36, %v3380_v36  ;;  %v3395_v52 = vadd.f32 %v3189_v34, %v1452_v44  ;;  %1387 = vst.msk [vmem:[#allocation2 + $0x68] sm:$0xff] %vm359_vm3, %v1322_v37  ;;  %v1484_v53 = vld [vmem:[#allocation2 + $0x158] sm:$0xff]  ;;  %1419 = vst.msk [vmem:[#allocation2 + $0x168] sm:$0xff] %vm359_vm3, %v1354_v40  ;;  %v1910_v37 = vsel %vm359_vm3, %v3304_v18, 0.0  ;;  %v2108_v44 = vadd.f32 %v2107_v17, %v2106_v19 }
 0x138   : > { %v2642_v61 = vpack.c.bf16 %v3384_v39, %v3384_v39  ;;  %v3412_v3 = vadd.f32 %v3189_v34, %v1484_v53  ;;  %v1912_v53 = vsel %vm359_vm3, %v3332_v48, 0.0  ;;  %v1911_v55 = vadd.f32 %v1910_v37, %v1909_v33  ;;  %v442_v37 = vld [vmem:[#allocation2 + $0x90] sm:$0xff] }
 0x139   : > { %1843 = vst.msk [vmem:[%s3203_s6 + $0x28] sm:$0xf] %vm1832_vm4, %v2610_v51  ;;  %v2611_v47 = vpack.c.bf16 %v3395_v52, %v3395_v52  ;;  %v2109_v51 = vsel %vm359_vm3, %v2039_v20, 0.0  ;;  %v2041_v48 = vmul.f32 %v3349_v63, %v3349_v63  ;;  %v2042_v49 = vmul.f32 %v3380_v36, %v3380_v36 }
 0x13a   : > { %v1110_v2 = vpop.f32.mrb[28].mxu0  ;;  %1875 = vst.msk [vmem:[%s3203_s6 + $0xa8] sm:$0xf] %vm1832_vm4, %v2642_v61  ;;  %v1238_v4 = vpop.f32.mrb[28].mxu1  ;;  %v2643_v23 = vpack.c.bf16 %v3412_v3, %v3412_v3  ;;  %v1913_v6 = vadd.f32 %v1912_v53, %v1911_v55 }
 0x13b   : > { %1844 = vst.msk [vmem:[%s3203_s6 + $0x2c] sm:$0xf] %vm1832_vm4, %v2611_v47  ;;  %v1323_v7 = vadd.f32 %v1110_v2, %v438_v58  ;;  %v1112_v9 = vpop.f32.mrb[29].mxu0  ;;  %v1355_v10 = vadd.f32 %v1238_v4, %v470_v62  ;;  %v1240_v13 = vpop.f32.mrb[29].mxu1  ;;  %v441_v58 = vld [vmem:[#allocation2 + $0x88] sm:$0xff]  ;;  %v2111_v47 = vsel %vm359_vm3, %v2040_v38, 0.0 }
 0x13c   : > { %v1453_v21 = vld [vmem:[#allocation2 + $0x60] sm:$0xff]  ;;  %v1113_v22 = vpop.f32.mrb[30].mxu0  ;;  %v1241_v8 = vpop.f32.mrb[30].mxu1  ;;  %1876 = vst.msk [vmem:[%s3203_s6 + $0xac] sm:$0xf] %vm1832_vm4, %v2643_v23 }
 0x13d   : > { %v1485_v24 = vld [vmem:[#allocation2 + $0x160] sm:$0xff]  ;;  %v3425_v25 = vadd.f32 %v3189_v34, %v1453_v21  ;;  %1388 = vst.msk [vmem:[#allocation2 + $0x70] sm:$0xff] %vm359_vm3, %v1323_v7  ;;  %v1324_v26 = vadd.f32 %v1113_v22, %v439_v11  ;;  %v1115_v29 = vpop.f32.mrb[31].mxu0  ;;  %1420 = vst.msk [vmem:[#allocation2 + $0x170] sm:$0xff] %vm359_vm3, %v1355_v10  ;;  %v1356_v31 = vadd.f32 %v1241_v8, %v471_v5  ;;  %v1243_v32 = vpop.f32.mrb[31].mxu1 }
 0x13e   : > { %v3429_v30 = vadd.f32 %v3189_v34, %v1485_v24  ;;  %v1454_v35 = vld [vmem:[#allocation2 + $0x68] sm:$0xff]  ;;  %v2110_v5 = vadd.f32 %v2109_v51, %v2108_v44  ;;  %v2115_v44 = vsel %vm359_vm3, %v2042_v49, 0.0 }
 0x13f   : > { %v2612_v40 = vpack.c.bf16 %v3425_v25, %v3425_v25  ;;  %v3441_v41 = vadd.f32 %v3189_v34, %v1454_v35  ;;  %1389 = vst.msk [vmem:[#allocation2 + $0x78] sm:$0xff] %vm359_vm3, %v1324_v26  ;;  %v1486_v42 = vld [vmem:[#allocation2 + $0x168] sm:$0xff]  ;;  %1421 = vst.msk [vmem:[#allocation2 + $0x178] sm:$0xff] %vm359_vm3, %v1356_v31  ;;  %v1914_v26 = vsel %vm359_vm3, %v3349_v63, 0.0  ;;  %v2113_v31 = vsel %vm359_vm3, %v2041_v48, 0.0 }
 0x140   : > { %v2644_v18 = vpack.c.bf16 %v3429_v30, %v3429_v30  ;;  %v3457_v61 = vadd.f32 %v3189_v34, %v1486_v42  ;;  %v2112_v8 = vadd.f32 %v2111_v47, %v2110_v5  ;;  %v1916_v63 = vsel %vm359_vm3, %v3380_v36, 0.0  ;;  %v443_v36 = vld [vmem:[#allocation2 + $0x98] sm:$0xff] }
 0x141   : > { %1845 = vst.msk [vmem:[%s3203_s6 + $0x30] sm:$0xf] %vm1832_vm4, %v2612_v40  ;;  %v2613_v54 = vpack.c.bf16 %v3441_v41, %v3441_v41  ;;  %v2043_v35 = vmul.f32 %v3395_v52, %v3395_v52  ;;  %v474_v40 = vld [vmem:[#allocation2 + $0x190] sm:$0xff]  ;;  %v1915_v42 = vadd.f32 %v1914_v26, %v1913_v6 }
 0x142   : > { %v1118_v57 = vpop.f32.mrb[32].mxu0  ;;  %1877 = vst.msk [vmem:[%s3203_s6 + $0xb0] sm:$0xf] %vm1832_vm4, %v2644_v18  ;;  %v1246_v62 = vpop.f32.mrb[32].mxu1  ;;  %v2645_v10 = vpack.c.bf16 %v3457_v61, %v3457_v61  ;;  %v2114_v18 = vadd.f32 %v2113_v31, %v2112_v8 }
 0x143   : > { %1846 = vst.msk [vmem:[%s3203_s6 + $0x34] sm:$0xf] %vm1832_vm4, %v2613_v54  ;;  %v1325_v1 = vadd.f32 %v1118_v57, %v440_v45  ;;  %v1120_v2 = vpop.f32.mrb[33].mxu0  ;;  %v1357_v11 = vadd.f32 %v1246_v62, %v472_v46  ;;  %v1248_v4 = vpop.f32.mrb[33].mxu1  ;;  %v475_v54 = vld [vmem:[#allocation2 + $0x198] sm:$0xff]  ;;  %v1917_v55 = vadd.f32 %v1916_v63, %v1915_v42  ;;  %v2044_v57 = vmul.f32 %v3425_v25, %v3425_v25 }
 0x144   : > { %v1455_v7 = vld [vmem:[#allocation2 + $0x70] sm:$0xff]  ;;  %v1121_v9 = vpop.f32.mrb[34].mxu0  ;;  %v1249_v16 = vpop.f32.mrb[34].mxu1  ;;  %1878 = vst.msk [vmem:[%s3203_s6 + $0xb4] sm:$0xf] %vm1832_vm4, %v2645_v10  ;;  %v2116_v48 = vadd.f32 %v2115_v44, %v2114_v18  ;;  %v2117_v2 = vsel %vm359_vm3, %v2043_v35, 0.0 }
 0x145   : > { %v1487_v13 = vld [vmem:[#allocation2 + $0x170] sm:$0xff]  ;;  %v3469_v17 = vadd.f32 %v3189_v34, %v1455_v7  ;;  %1390 = vst.msk [vmem:[#allocation2 + $0x80] sm:$0xff] %vm359_vm3, %v1325_v1  ;;  %v1326_v20 = vadd.f32 %v1121_v9, %v441_v58  ;;  %v1123_v21 = vpop.f32.mrb[35].mxu0  ;;  %1422 = vst.msk [vmem:[#allocation2 + $0x180] sm:$0xff] %vm359_vm3, %v1357_v11  ;;  %v1358_v23 = vadd.f32 %v1249_v16, %v473_v0  ;;  %v1251_v24 = vpop.f32.mrb[35].mxu1  ;;  %v1918_v1 = vsel %vm359_vm3, %v3395_v52, 0.0 }
 0x146   : > { %v3473_v22 = vadd.f32 %v3189_v34, %v1487_v13  ;;  %v1456_v29 = vld [vmem:[#allocation2 + $0x78] sm:$0xff]  ;;  %v2045_v24 = vmul.f32 %v3441_v41, %v3441_v41  ;;  %v2118_v31 = vadd.f32 %v2117_v2, %v2116_v48  ;;  %v476_v35 = vld [vmem:[#allocation2 + $0x1a0] sm:$0xff]  ;;  %v445_v44 = vld [vmem:[#allocation2 + $0xa8] sm:$0xff] }
 0x147   : > { %v2614_v32 = vpack.c.bf16 %v3469_v17, %v3469_v17  ;;  %v3484_v19 = vadd.f32 %v3189_v34, %v1456_v29  ;;  %1391 = vst.msk [vmem:[#allocation2 + $0x88] sm:$0xff] %vm359_vm3, %v1326_v20  ;;  %v1488_v33 = vld [vmem:[#allocation2 + $0x178] sm:$0xff]  ;;  %1423 = vst.msk [vmem:[#allocation2 + $0x188] sm:$0xff] %vm359_vm3, %v1358_v23  ;;  %v1920_v20 = vsel %vm359_vm3, %v3425_v25, 0.0  ;;  %v2119_v23 = vsel %vm359_vm3, %v2044_v57, 0.0 }
 0x148   : > { %v2646_v38 = vpack.c.bf16 %v3473_v22, %v3473_v22  ;;  %v3502_v51 = vadd.f32 %v3189_v34, %v1488_v33  ;;  %v1919_v25 = vadd.f32 %v1918_v1, %v1917_v55  ;;  %v444_v33 = vld [vmem:[#allocation2 + $0xa0] sm:$0xff] }
 0x149   : > { %1847 = vst.msk [vmem:[%s3203_s6 + $0x38] sm:$0xf] %vm1832_vm4, %v2614_v32  ;;  %v2615_v45 = vpack.c.bf16 %v3484_v19, %v3484_v19  ;;  %v2046_v32 = vmul.f32 %v3469_v17, %v3469_v17 }
 0x14a   : > { %v1126_v46 = vpop.f32.mrb[36].mxu0  ;;  %1879 = vst.msk [vmem:[%s3203_s6 + $0xb8] sm:$0xf] %vm1832_vm4, %v2646_v38  ;;  %v1254_v53 = vpop.f32.mrb[36].mxu1  ;;  %v2647_v5 = vpack.c.bf16 %v3502_v51, %v3502_v51  ;;  %v1921_v38 = vadd.f32 %v1920_v20, %v1919_v25  ;;  %v446_v25 = vld [vmem:[#allocation2 + $0xb0] sm:$0xff] }
 0x14b   : > { %1848 = vst.msk [vmem:[%s3203_s6 + $0x3c] sm:$0xf] %vm1832_vm4, %v2615_v45  ;;  %v1327_v58 = vadd.f32 %v1126_v46, %v442_v37  ;;  %v1128_v62 = vpop.f32.mrb[37].mxu0  ;;  %v1359_v0 = vadd.f32 %v1254_v53, %v474_v40  ;;  %v1256_v47 = vpop.f32.mrb[37].mxu1  ;;  %v2120_v40 = vadd.f32 %v2119_v23, %v2118_v31  ;;  %v477_v46 = vld [vmem:[#allocation2 + $0x1a8] sm:$0xff]  ;;  %v2121_v53 = vsel %vm359_vm3, %v2045_v24, 0.0 }
 0x14c   : > { %v1457_v11 = vld [vmem:[#allocation2 + $0x80] sm:$0xff]  ;;  %v1129_v4 = vpop.f32.mrb[38].mxu0  ;;  %v1257_v49 = vpop.f32.mrb[38].mxu1  ;;  %1880 = vst.msk [vmem:[%s3203_s6 + $0xbc] sm:$0xf] %vm1832_vm4, %v2647_v5  ;;  %v1924_v62 = vsel %vm359_vm3, %v3469_v17, 0.0  ;;  %v2047_v47 = vmul.f32 %v3484_v19, %v3484_v19 }
 0x14d   : > { %v1489_v6 = vld [vmem:[#allocation2 + $0x180] sm:$0xff]  ;;  %v3514_v7 = vadd.f32 %v3189_v34, %v1457_v11  ;;  %1392 = vst.msk [vmem:[#allocation2 + $0x90] sm:$0xff] %vm359_vm3, %v1327_v58  ;;  %v1328_v9 = vadd.f32 %v1129_v4, %v443_v36  ;;  %v1131_v10 = vpop.f32.mrb[39].mxu0  ;;  %1424 = vst.msk [vmem:[#allocation2 + $0x190] sm:$0xff] %vm359_vm3, %v1359_v0  ;;  %v1360_v52 = vadd.f32 %v1257_v49, %v475_v54  ;;  %v1259_v16 = vpop.f32.mrb[39].mxu1  ;;  %v1922_v36 = vsel %vm359_vm3, %v3441_v41, 0.0 }
 0x14e   : > { %v3518_v13 = vadd.f32 %v3189_v34, %v1489_v6  ;;  %v1458_v21 = vld [vmem:[#allocation2 + $0x88] sm:$0xff]  ;;  %v2123_v0 = vsel %vm359_vm3, %v2046_v32, 0.0  ;;  %v1923_v10 = vadd.f32 %v1922_v36, %v1921_v38  ;;  %v478_v32 = vld [vmem:[#allocation2 + $0x1b0] sm:$0xff] }
 0x14f   : > { %v2616_v8 = vpack.c.bf16 %v3514_v7, %v3514_v7  ;;  %v3531_v26 = vadd.f32 %v3189_v34, %v1458_v21  ;;  %1393 = vst.msk [vmem:[#allocation2 + $0x98] sm:$0xff] %vm359_vm3, %v1328_v9  ;;  %v1490_v29 = vld [vmem:[#allocation2 + $0x188] sm:$0xff]  ;;  %1425 = vst.msk [vmem:[#allocation2 + $0x198] sm:$0xff] %vm359_vm3, %v1360_v52  ;;  %v2122_v52 = vadd.f32 %v2121_v53, %v2120_v40  ;;  %v447_v40 = vld [vmem:[#allocation2 + $0xb8] sm:$0xff] }
 0x150   : > { %v2648_v63 = vpack.c.bf16 %v3518_v13, %v3518_v13  ;;  %v3546_v45 = vadd.f32 %v3189_v34, %v1490_v29  ;;  %v2048_v20 = vmul.f32 %v3514_v7, %v3514_v7 }
 0x151   : > { %1849 = vst.msk [vmem:[%s3203_s6 + $0x40] sm:$0xf] %vm1832_vm4, %v2616_v8  ;;  %v2617_v37 = vpack.c.bf16 %v3531_v26, %v3531_v26  ;;  %v1925_v8 = vadd.f32 %v1924_v62, %v1923_v10  ;;  %v2124_v29 = vadd.f32 %v2123_v0, %v2122_v52  ;;  %v1930_v10 = vsel %vm359_vm3, %v3531_v26, 0.0 }
 0x152   : > { %v1134_v42 = vpop.f32.mrb[40].mxu0  ;;  %1881 = vst.msk [vmem:[%s3203_s6 + $0xc0] sm:$0xf] %vm1832_vm4, %v2648_v63  ;;  %v1262_v18 = vpop.f32.mrb[40].mxu1  ;;  %v2649_v41 = vpack.c.bf16 %v3546_v45, %v3546_v45  ;;  %v2125_v63 = vsel %vm359_vm3, %v2047_v47, 0.0 }
 0x153   : > { %1850 = vst.msk [vmem:[%s3203_s6 + $0x44] sm:$0xf] %vm1832_vm4, %v2617_v37  ;;  %v1329_v54 = vadd.f32 %v1134_v42, %v444_v33  ;;  %v1136_v55 = vpop.f32.mrb[41].mxu0  ;;  %v1361_v57 = vadd.f32 %v1262_v18, %v476_v35  ;;  %v1264_v58 = vpop.f32.mrb[41].mxu1  ;;  %v1926_v33 = vsel %vm359_vm3, %v3484_v19, 0.0  ;;  %v1928_v37 = vsel %vm359_vm3, %v3514_v7, 0.0 }
 0x154   : > { %v1459_v48 = vld [vmem:[#allocation2 + $0x90] sm:$0xff]  ;;  %v1137_v1 = vpop.f32.mrb[42].mxu0  ;;  %v1265_v11 = vpop.f32.mrb[42].mxu1  ;;  %1882 = vst.msk [vmem:[%s3203_s6 + $0xc4] sm:$0xf] %vm1832_vm4, %v2649_v41  ;;  %v479_v18 = vld [vmem:[#allocation2 + $0x1b8] sm:$0xff]  ;;  %v1927_v55 = vadd.f32 %v1926_v33, %v1925_v8 }
 0x155   : > { %v1491_v2 = vld [vmem:[#allocation2 + $0x190] sm:$0xff]  ;;  %v3561_v4 = vadd.f32 %v3189_v34, %v1459_v48  ;;  %1394 = vst.msk [vmem:[#allocation2 + $0xa0] sm:$0xff] %vm359_vm3, %v1329_v54  ;;  %v1330_v5 = vadd.f32 %v1137_v1, %v445_v44  ;;  %v1139_v17 = vpop.f32.mrb[43].mxu0  ;;  %1426 = vst.msk [vmem:[#allocation2 + $0x1a0] sm:$0xff] %vm359_vm3, %v1361_v57  ;;  %v1362_v49 = vadd.f32 %v1265_v11, %v477_v46  ;;  %v1267_v9 = vpop.f32.mrb[43].mxu1  ;;  %v2127_v19 = vsel %vm359_vm3, %v2048_v20, 0.0 }
 0x156   : > { %v3565_v6 = vadd.f32 %v3189_v34, %v1491_v2  ;;  %v1460_v16 = vld [vmem:[#allocation2 + $0x98] sm:$0xff]  ;;  %v2049_v46 = vmul.f32 %v3531_v26, %v3531_v26  ;;  %v2126_v57 = vadd.f32 %v2125_v63, %v2124_v29  ;;  %v448_v29 = vld [vmem:[#allocation2 + $0xc0] sm:$0xff] }
 0x157   : > { %v2618_v21 = vpack.c.bf16 %v3561_v4, %v3561_v4  ;;  %v3575_v23 = vadd.f32 %v3189_v34, %v1460_v16  ;;  %1395 = vst.msk [vmem:[#allocation2 + $0xa8] sm:$0xff] %vm359_vm3, %v1330_v5  ;;  %v1492_v24 = vld [vmem:[#allocation2 + $0x198] sm:$0xff]  ;;  %1427 = vst.msk [vmem:[#allocation2 + $0x1a8] sm:$0xff] %vm359_vm3, %v1362_v49  ;;  %v1929_v49 = vadd.f32 %v1928_v37, %v1927_v55  ;;  %v449_v37 = vld [vmem:[#allocation2 + $0xc8] sm:$0xff] }
 0x158   : > { %v2650_v31 = vpack.c.bf16 %v3565_v6, %v3565_v6  ;;  %v3593_v42 = vadd.f32 %v3189_v34, %v1492_v24  ;;  %v2128_v9 = vadd.f32 %v2127_v19, %v2126_v57  ;;  %v2129_v16 = vsel %vm359_vm3, %v2049_v46, 0.0 }
 0x159   : > { %1851 = vst.msk [vmem:[%s3203_s6 + $0x48] sm:$0xf] %vm1832_vm4, %v2618_v21  ;;  %v2619_v35 = vpack.c.bf16 %v3575_v23, %v3575_v23  ;;  %v2050_v20 = vmul.f32 %v3561_v4, %v3561_v4  ;;  %v1931_v33 = vadd.f32 %v1930_v10, %v1929_v49 }
 0x15a   : > { %v1142_v38 = vpop.f32.mrb[44].mxu0  ;;  %1883 = vst.msk [vmem:[%s3203_s6 + $0xc8] sm:$0xf] %vm1832_vm4, %v2650_v31  ;;  %v1270_v44 = vpop.f32.mrb[44].mxu1  ;;  %v2651_v0 = vpack.c.bf16 %v3593_v42, %v3593_v42  ;;  %v1932_v31 = vsel %vm359_vm3, %v3561_v4, 0.0  ;;  %v2130_v63 = vadd.f32 %v2129_v16, %v2128_v9  ;;  %v2051_v4 = vmul.f32 %v3575_v23, %v3575_v23 }
 0x15b   : > { %1852 = vst.msk [vmem:[%s3203_s6 + $0x4c] sm:$0xf] %vm1832_vm4, %v2619_v35  ;;  %v1331_v36 = vadd.f32 %v1142_v38, %v446_v25  ;;  %v1144_v53 = vpop.f32.mrb[45].mxu0  ;;  %v1363_v54 = vadd.f32 %v1270_v44, %v478_v32  ;;  %v1272_v7 = vpop.f32.mrb[45].mxu1  ;;  %v480_v25 = vld [vmem:[#allocation2 + $0x1c0] sm:$0xff]  ;;  %v481_v44 = vld [vmem:[#allocation2 + $0x1c8] sm:$0xff] }
 0x15c   : > { %v1461_v58 = vld [vmem:[#allocation2 + $0xa0] sm:$0xff]  ;;  %v1145_v62 = vpop.f32.mrb[46].mxu0  ;;  %v1273_v48 = vpop.f32.mrb[46].mxu1  ;;  %1884 = vst.msk [vmem:[%s3203_s6 + $0xcc] sm:$0xf] %vm1832_vm4, %v2651_v0  ;;  %v1934_v7 = vsel %vm359_vm3, %v3575_v23, 0.0 }
 0x15d   : > { %v1493_v47 = vld [vmem:[#allocation2 + $0x1a0] sm:$0xff]  ;;  %v1532_v1 = vadd.f32 %v3189_v34, %v1461_v58  ;;  %1396 = vst.msk [vmem:[#allocation2 + $0xb0] sm:$0xff] %vm359_vm3, %v1331_v36  ;;  %v1332_v41 = vadd.f32 %v1145_v62, %v447_v40  ;;  %v1147_v2 = vpop.f32.mrb[47].mxu0  ;;  %1428 = vst.msk [vmem:[#allocation2 + $0x1b0] sm:$0xff] %vm359_vm3, %v1363_v54  ;;  %v1364_v5 = vadd.f32 %v1273_v48, %v479_v18  ;;  %v1275_v17 = vpop.f32.mrb[47].mxu1  ;;  %v2131_v18 = vsel %vm359_vm3, %v2050_v20, 0.0 }
 0x15e   : > { %v3605_v11 = vadd.f32 %v3189_v34, %v1493_v47  ;;  %v1462_v52 = vld [vmem:[#allocation2 + $0xa8] sm:$0xff]  ;;  %v1933_v54 = vadd.f32 %v1932_v31, %v1931_v33  ;;  %v2132_v49 = vadd.f32 %v2131_v18, %v2130_v63  ;;  %v2133_v10 = vsel %vm359_vm3, %v2051_v4, 0.0  ;;  %v3655_v20 = vld [vmem:[%s3972_s2] ss:$0 sm:$0xff]  ;;  %v483_v18 = vld [vmem:[#allocation2 + $0x1d8] sm:$0xff] }
 0x15f   : > { %v2620_v21 = vpack.c.bf16 %v1532_v1, %v1532_v1  ;;  %v3616_v24 = vadd.f32 %v3189_v34, %v1462_v52  ;;  %1397 = vst.msk [vmem:[#allocation2 + $0xb8] sm:$0xff] %vm359_vm3, %v1332_v41  ;;  %v1494_v8 = vld [vmem:[#allocation2 + $0x1a8] sm:$0xff]  ;;  %1429 = vst.msk [vmem:[#allocation2 + $0x1b8] sm:$0xff] %vm359_vm3, %v1364_v5  ;;  %v2052_v55 = vmul.f32 %v1532_v1, %v1532_v1  ;;  %v1936_v52 = vsel %vm359_vm3, %v1532_v1, 0.0 }
 0x160   : > { %v2652_v26 = vpack.c.bf16 %v3605_v11, %v3605_v11  ;;  %v3631_v38 = vadd.f32 %v3189_v34, %v1494_v8  ;;  %v1935_v8 = vadd.f32 %v1934_v7, %v1933_v54  ;;  %v2134_v33 = vadd.f32 %v2133_v10, %v2132_v49 }
 0x161   : > { %1853 = vst.msk [vmem:[%s3203_s6 + $0x50] sm:$0xf] %vm1832_vm4, %v2620_v21  ;;  %v2621_v32 = vpack.c.bf16 %v3616_v24, %v3616_v24  ;;  %v2135_v31 = vsel %vm359_vm3, %v2052_v55, 0.0  ;;  %v1938_v4 = vsel %vm359_vm3, %v3616_v24, 0.0 }
 0x162   : > { %v1150_v35 = vpop.f32.mrb[48].mxu0  ;;  %1885 = vst.msk [vmem:[%s3203_s6 + $0xd0] sm:$0xf] %vm1832_vm4, %v2652_v26  ;;  %v1278_v40 = vpop.f32.mrb[48].mxu1  ;;  %v2653_v62 = vpack.c.bf16 %v3631_v38, %v3631_v38  ;;  %v450_v26 = vld [vmem:[#allocation2 + $0xd0] sm:$0xff]  ;;  %v1937_v63 = vadd.f32 %v1936_v52, %v1935_v8  ;;  %v2136_v7 = vadd.f32 %v2135_v31, %v2134_v33  ;;  %v452_v31 = vld [vmem:[#allocation2 + $0xe0] sm:$0xff] }
 0x163   : > { %1854 = vst.msk [vmem:[%s3203_s6 + $0x54] sm:$0xf] %vm1832_vm4, %v2621_v32  ;;  %v1333_v19 = vadd.f32 %v1150_v35, %v448_v29  ;;  %v1152_v46 = vpop.f32.mrb[49].mxu0  ;;  %v1365_v36 = vadd.f32 %v1278_v40, %v480_v25  ;;  %v1280_v53 = vpop.f32.mrb[49].mxu1  ;;  %v2053_v29 = vmul.f32 %v3616_v24, %v3616_v24  ;;  %v482_v25 = vld [vmem:[#allocation2 + $0x1d0] sm:$0xff]  ;;  %v484_v33 = vld [vmem:[#allocation2 + $0x1e0] sm:$0xff] }
 0x164   : > { %v1463_v57 = vld [vmem:[#allocation2 + $0xb0] sm:$0xff]  ;;  %v1153_v58 = vpop.f32.mrb[50].mxu0  ;;  %v1281_v47 = vpop.f32.mrb[50].mxu1  ;;  %1886 = vst.msk [vmem:[%s3203_s6 + $0xd4] sm:$0xf] %vm1832_vm4, %v2653_v62 }
 0x165   : > { %v1495_v0 = vld [vmem:[#allocation2 + $0x1b0] sm:$0xff]  ;;  %v1534_v48 = vadd.f32 %v3189_v34, %v1463_v57  ;;  %1398 = vst.msk [vmem:[#allocation2 + $0xc0] sm:$0xff] %vm359_vm3, %v1333_v19  ;;  %v1334_v41 = vadd.f32 %v1153_v58, %v449_v37  ;;  %v1155_v2 = vpop.f32.mrb[51].mxu0  ;;  %1430 = vst.msk [vmem:[#allocation2 + $0x1c0] sm:$0xff] %vm359_vm3, %v1365_v36  ;;  %v1366_v23 = vadd.f32 %v1281_v47, %v481_v44  ;;  %v1283_v17 = vpop.f32.mrb[51].mxu1  ;;  %v451_v37 = vld [vmem:[#allocation2 + $0xd8] sm:$0xff] }
 0x166   : > { %v3645_v5 = vadd.f32 %v3189_v34, %v1495_v0  ;;  %v1464_v9 = vld [vmem:[#allocation2 + $0xb8] sm:$0xff]  ;;  %v2137_v55 = vsel %vm359_vm3, %v2053_v29, 0.0 }
 0x167   : > { %v2622_v16 = vpack.c.bf16 %v1534_v48, %v1534_v48  ;;  %v1535_v34 = vadd.f32 %v3655_v20, %v1464_v9  ;;  %1399 = vst.msk [vmem:[#allocation2 + $0xc8] sm:$0xff] %vm359_vm3, %v1334_v41  ;;  %v1496_v21 = vld [vmem:[#allocation2 + $0x1b8] sm:$0xff]  ;;  %1431 = vst.msk [vmem:[#allocation2 + $0x1c8] sm:$0xff] %vm359_vm3, %v1366_v23  ;;  %v2054_v19 = vmul.f32 %v1534_v48, %v1534_v48  ;;  %v1940_v57 = vsel %vm359_vm3, %v1534_v48, 0.0 }
 0x168   : > { %v2654_v1 = vpack.c.bf16 %v3645_v5, %v3645_v5  ;;  %v3670_v40 = vadd.f32 %v3655_v20, %v1496_v21  ;;  %v1939_v9 = vadd.f32 %v1938_v4, %v1937_v63 }
 0x169   : > { %1855 = vst.msk [vmem:[%s3203_s6 + $0x58] sm:$0xf] %vm1832_vm4, %v2622_v16  ;;  %v2623_v32 = vpack.c.bf16 %v1535_v34, %v1535_v34  ;;  %v2139_v52 = vsel %vm359_vm3, %v2054_v19, 0.0  ;;  %v2055_v16 = vmul.f32 %v1535_v34, %v1535_v34  ;;  %v1942_v63 = vsel %vm359_vm3, %v1535_v34, 0.0 }
 0x16a   : > { %v1158_v35 = vpop.f32.mrb[52].mxu0  ;;  %1887 = vst.msk [vmem:[%s3203_s6 + $0xd8] sm:$0xf] %vm1832_vm4, %v2654_v1  ;;  %v1286_v44 = vpop.f32.mrb[52].mxu1  ;;  %v2655_v0 = vpack.c.bf16 %v3670_v40, %v3670_v40  ;;  %v1941_v1 = vadd.f32 %v1940_v57, %v1939_v9 }
 0x16b   : > { %1856 = vst.msk [vmem:[%s3203_s6 + $0x5c] sm:$0xf] %vm1832_vm4, %v2623_v32  ;;  %v1335_v46 = vadd.f32 %v1158_v35, %v450_v26  ;;  %v1160_v36 = vpop.f32.mrb[53].mxu0  ;;  %v1367_v53 = vadd.f32 %v1286_v44, %v482_v25  ;;  %v1288_v54 = vpop.f32.mrb[53].mxu1  ;;  %v2138_v26 = vadd.f32 %v2137_v55, %v2136_v7 }
 0x16c   : > { %v1465_v58 = vld [vmem:[#allocation2 + $0xc0] sm:$0xff]  ;;  %v1161_v62 = vpop.f32.mrb[54].mxu0  ;;  %v1289_v24 = vpop.f32.mrb[54].mxu1  ;;  %1888 = vst.msk [vmem:[%s3203_s6 + $0xdc] sm:$0xf] %vm1832_vm4, %v2655_v0  ;;  %v2141_v36 = vsel %vm359_vm3, %v2055_v16, 0.0  ;;  %v1943_v57 = vadd.f32 %v1942_v63, %v1941_v1 }
 0x16d   : > { %v1497_v47 = vld [vmem:[#allocation2 + $0x1c0] sm:$0xff]  ;;  %v1536_v41 = vadd.f32 %v3655_v20, %v1465_v58  ;;  %1400 = vst.msk [vmem:[#allocation2 + $0xd0] sm:$0xff] %vm359_vm3, %v1335_v46  ;;  %v1336_v2 = vadd.f32 %v1161_v62, %v451_v37  ;;  %v1163_v23 = vpop.f32.mrb[55].mxu0  ;;  %1432 = vst.msk [vmem:[#allocation2 + $0x1d0] sm:$0xff] %vm359_vm3, %v1367_v53  ;;  %v1368_v48 = vadd.f32 %v1289_v24, %v483_v18  ;;  %v1291_v49 = vpop.f32.mrb[55].mxu1  ;;  %v453_v18 = vld [vmem:[#allocation2 + $0xe8] sm:$0xff] }
 0x16e   : > { %v3683_v17 = vadd.f32 %v3655_v20, %v1497_v47  ;;  %v1466_v10 = vld [vmem:[#allocation2 + $0xc8] sm:$0xff]  ;;  %v2140_v37 = vadd.f32 %v2139_v52, %v2138_v26  ;;  %v454_v63 = vld [vmem:[#allocation2 + $0xf0] sm:$0xff] }
 0x16f   : > { %v2624_v21 = vpack.c.bf16 %v1536_v41, %v1536_v41  ;;  %v1537_v8 = vadd.f32 %v3655_v20, %v1466_v10  ;;  %1401 = vst.msk [vmem:[#allocation2 + $0xd8] sm:$0xff] %vm359_vm3, %v1336_v2  ;;  %v1498_v29 = vld [vmem:[#allocation2 + $0x1c8] sm:$0xff]  ;;  %1433 = vst.msk [vmem:[#allocation2 + $0x1d8] sm:$0xff] %vm359_vm3, %v1368_v48  ;;  %v2056_v25 = vmul.f32 %v1536_v41, %v1536_v41  ;;  %v1944_v53 = vsel %vm359_vm3, %v1536_v41, 0.0 }
 0x170   : > { %v2656_v32 = vpack.c.bf16 %v3683_v17, %v3683_v17  ;;  %v3700_v4 = vadd.f32 %v3655_v20, %v1498_v29  ;;  %v485_v46 = vld [vmem:[#allocation2 + $0x1e8] sm:$0xff]  ;;  %v2142_v16 = vadd.f32 %v2141_v36, %v2140_v37  ;;  %v486_v37 = vld [vmem:[#allocation2 + $0x1f0] sm:$0xff] }
 0x171   : > { %1857 = vst.msk [vmem:[%s3203_s6 + $0x60] sm:$0xf] %vm1832_vm4, %v2624_v21  ;;  %v2625_v35 = vpack.c.bf16 %v1537_v8, %v1537_v8  ;;  %v2143_v58 = vsel %vm359_vm3, %v2056_v25, 0.0  ;;  %v2057_v62 = vmul.f32 %v1537_v8, %v1537_v8  ;;  %v1945_v21 = vadd.f32 %v1944_v53, %v1943_v57  ;;  %v455_v53 = vld [vmem:[#allocation2 + $0xf8] sm:$0xff] }
 0x172   : > { %v1166_v44 = vpop.f32.mrb[56].mxu0  ;;  %1889 = vst.msk [vmem:[%s3203_s6 + $0xe0] sm:$0xf] %vm1832_vm4, %v2656_v32  ;;  %v1294_v19 = vpop.f32.mrb[56].mxu1  ;;  %v2657_v24 = vpack.c.bf16 %v3700_v4, %v3700_v4  ;;  %v1946_v26 = vsel %vm359_vm3, %v1537_v8, 0.0 }
 0x173   : > { %1858 = vst.msk [vmem:[%s3203_s6 + $0x64] sm:$0xf] %vm1832_vm4, %v2625_v35  ;;  %v1337_v34 = vadd.f32 %v1166_v44, %v452_v31  ;;  %v1168_v54 = vpop.f32.mrb[57].mxu0  ;;  %v1369_v7 = vadd.f32 %v1294_v19, %v484_v33  ;;  %v1296_v55 = vpop.f32.mrb[57].mxu1  ;;  %v2144_v33 = vadd.f32 %v2143_v58, %v2142_v16  ;;  %v2145_v44 = vsel %vm359_vm3, %v2057_v62, 0.0 }
 0x174   : > { %v1467_v0 = vld [vmem:[#allocation2 + $0xd0] sm:$0xff]  ;;  %v1169_v47 = vpop.f32.mrb[58].mxu0  ;;  %v1297_v23 = vpop.f32.mrb[58].mxu1  ;;  %1890 = vst.msk [vmem:[%s3203_s6 + $0xe4] sm:$0xf] %vm1832_vm4, %v2657_v24  ;;  %v1947_v19 = vadd.f32 %v1946_v26, %v1945_v21 }
 0x175   : > { %v1499_v2 = vld [vmem:[#allocation2 + $0x1d0] sm:$0xff]  ;;  %v1538_v41 = vadd.f32 %v3655_v20, %v1467_v0  ;;  %1402 = vst.msk [vmem:[#allocation2 + $0xe0] sm:$0xff] %vm359_vm3, %v1337_v34  ;;  %v1338_v48 = vadd.f32 %v1169_v47, %v453_v18  ;;  %v1171_v49 = vpop.f32.mrb[59].mxu0  ;;  %1434 = vst.msk [vmem:[#allocation2 + $0x1e0] sm:$0xff] %vm359_vm3, %v1369_v7  ;;  %v1370_v10 = vadd.f32 %v1297_v23, %v485_v46  ;;  %v1299_v52 = vpop.f32.mrb[59].mxu1  ;;  %v487_v7 = vld [vmem:[#allocation2 + $0x1f8] sm:$0xff] }
 0x176   : > { %v3712_v9 = vadd.f32 %v3655_v20, %v1499_v2  ;;  %v1468_v29 = vld [vmem:[#allocation2 + $0xd8] sm:$0xff]  ;;  %v2146_v47 = vadd.f32 %v2145_v44, %v2144_v33 }
 0x177   : > { %v2626_v1 = vpack.c.bf16 %v1538_v41, %v1538_v41  ;;  %v2058_v25 = vmul.f32 %v1538_v41, %v1538_v41  ;;  %v1539_v31 = vadd.f32 %v3655_v20, %v1468_v29  ;;  %1403 = vst.msk [vmem:[#allocation2 + $0xe8] sm:$0xff] %vm359_vm3, %v1338_v48  ;;  %v1500_v32 = vld [vmem:[#allocation2 + $0x1d8] sm:$0xff]  ;;  %1435 = vst.msk [vmem:[#allocation2 + $0x1e8] sm:$0xff] %vm359_vm3, %v1370_v10  ;;  %v1948_v8 = vsel %vm359_vm3, %v1538_v41, 0.0 }
 0x178   : > { %v2658_v35 = vpack.c.bf16 %v3712_v9, %v3712_v9  ;;  %v3730_v34 = vadd.f32 %v3655_v20, %v1500_v32  ;;  %v1949_v24 = vadd.f32 %v1948_v8, %v1947_v19 }
 0x179   : > { %1859 = vst.msk [vmem:[%s3203_s6 + $0x68] sm:$0xf] %vm1832_vm4, %v2626_v1  ;;  %v2627_v18 = vpack.c.bf16 %v1539_v31, %v1539_v31  ;;  %v2059_v46 = vmul.f32 %v1539_v31, %v1539_v31  ;;  %v2147_v55 = vsel %vm359_vm3, %v2058_v25, 0.0  ;;  %v1950_v2 = vsel %vm359_vm3, %v1539_v31, 0.0 }
 0x17a   : > { %v1174_v36 = vpop.f32.mrb[60].mxu0  ;;  %1891 = vst.msk [vmem:[%s3203_s6 + $0xe8] sm:$0xf] %vm1832_vm4, %v2658_v35  ;;  %v1302_v54 = vpop.f32.mrb[60].mxu1  ;;  %v2659_v48 = vpack.c.bf16 %v3730_v34, %v3730_v34  ;;  %v2148_v25 = vadd.f32 %v2147_v55, %v2146_v47  ;;  %v1951_v8 = vadd.f32 %v1950_v2, %v1949_v24 }
 0x17b   : > { %1860 = vst.msk [vmem:[%s3203_s6 + $0x6c] sm:$0xf] %vm1832_vm4, %v2627_v18  ;;  %v1339_v57 = vadd.f32 %v1174_v36, %v454_v63  ;;  %v1176_v58 = vpop.f32.mrb[61].mxu0  ;;  %v1371_v62 = vadd.f32 %v1302_v54, %v486_v37  ;;  %v1304_v0 = vpop.f32.mrb[61].mxu1  ;;  %v2149_v31 = vsel %vm359_vm3, %v2059_v46, 0.0 }
 0x17c   : > { %v1469_v23 = vld [vmem:[#allocation2 + $0xe0] sm:$0xff]  ;;  %v1177_v41 = vpop.f32.mrb[62].mxu0  ;;  %v1305_v10 = vpop.f32.mrb[62].mxu1  ;;  %1892 = vst.msk [vmem:[%s3203_s6 + $0xec] sm:$0xf] %vm1832_vm4, %v2659_v48 }
 0x17d   : > { %v1501_v49 = vld [vmem:[#allocation2 + $0x1e0] sm:$0xff]  ;;  %v1540_v52 = vadd.f32 %v3655_v20, %v1469_v23  ;;  %1404 = vst.msk [vmem:[#allocation2 + $0xf0] sm:$0xff] %vm359_vm3, %v1339_v57  ;;  %v1340_v16 = vadd.f32 %v1177_v41, %v455_v53  ;;  %v1179_v21 = vpop.f32.mrb[63].mxu0  ;;  %1436 = vst.msk [vmem:[#allocation2 + $0x1f0] sm:$0xff] %vm359_vm3, %v1371_v62  ;;  %v1372_v26 = vadd.f32 %v1305_v10, %v487_v7  ;;  %v1307_v1 = vpop.f32.mrb[63].mxu1 }
 0x17e   : > { %v3741_v29 = vadd.f32 %v3655_v20, %v1501_v49  ;;  %v1470_v32 = vld [vmem:[#allocation2 + $0xe8] sm:$0xff]  ;;  %v2150_v53 = vadd.f32 %v2149_v31, %v2148_v25  ;;  %v2064_v21 = vmul.f32 %v3197_v50, %v3197_v50 }
 0x17f   : > { %v2628_v33 = vpack.c.bf16 %v1540_v52, %v1540_v52  ;;  %v1952_v63 = vsel %vm359_vm3, %v1540_v52, 0.0  ;;  %v2060_v35 = vmul.f32 %v1540_v52, %v1540_v52  ;;  %v1541_v37 = vadd.f32 %v3655_v20, %v1470_v32  ;;  %1405 = vst.msk [vmem:[#allocation2 + $0xf8] sm:$0xff] %vm359_vm3, %v1340_v16  ;;  %v1502_v44 = vld [vmem:[#allocation2 + $0x1e8] sm:$0xff]  ;;  %1437 = vst.msk [vmem:[#allocation2 + $0x1f8] sm:$0xff] %vm359_vm3, %v1372_v26 }
 0x180   : > { %v2660_v18 = vpack.c.bf16 %v3741_v29, %v3741_v29  ;;  %v1953_v54 = vadd.f32 %v1952_v63, %v1951_v8  ;;  %v3759_v7 = vadd.f32 %v3655_v20, %v1502_v44  ;;  %v1960_v8 = vsel %vm359_vm3, %v3197_v50, 0.0 }
 0x181   : > { %1861 = vst.msk [vmem:[%s3203_s6 + $0x70] sm:$0xf] %vm1832_vm4, %v2628_v33  ;;  %v2151_v19 = vsel %vm359_vm3, %v2060_v35, 0.0  ;;  %v2629_v46 = vpack.c.bf16 %v1541_v37, %v1541_v37  ;;  %v2061_v36 = vmul.f32 %v1541_v37, %v1541_v37  ;;  %v1954_v55 = vsel %vm359_vm3, %v1541_v37, 0.0 }
 0x182   : > { %1893 = vst.msk [vmem:[%s3203_s6 + $0xf0] sm:$0xf] %vm1832_vm4, %v2660_v18  ;;  %v2152_v57 = vadd.f32 %v2151_v19, %v2150_v53  ;;  %v2661_v62 = vpack.c.bf16 %v3759_v7, %v3759_v7  ;;  %v1955_v23 = vadd.f32 %v1954_v55, %v1953_v54  ;;  %v2065_v18 = vmul.f32 %v3215_v59, %v3215_v59 }
 0x183   : > { %1862 = vst.msk [vmem:[%s3203_s6 + $0x74] sm:$0xf] %vm1832_vm4, %v2629_v46  ;;  %v2153_v47 = vsel %vm359_vm3, %v2061_v36, 0.0  ;;  %v2159_v54 = vsel %vm359_vm3, %v2064_v21, 0.0  ;;  %v2066_v50 = vmul.f32 %v3234_v14, %v3234_v14 }
 0x184   : > { %v1471_v58 = vld [vmem:[#allocation2 + $0xf0] sm:$0xff]  ;;  %1894 = vst.msk [vmem:[%s3203_s6 + $0xf4] sm:$0xf] %vm1832_vm4, %v2661_v62  ;;  %v2154_v26 = vadd.f32 %v2153_v47, %v2152_v57  ;;  %v1964_v62 = vsel %vm359_vm3, %v3234_v14, 0.0  ;;  %v1968_v14 = vsel %vm359_vm3, %v3264_v43, 0.0 }
 0x185   : > { %v1503_v0 = vld [vmem:[#allocation2 + $0x1f0] sm:$0xff]  ;;  %v1542_v24 = vadd.f32 %v3655_v20, %v1471_v58  ;;  %v2161_v58 = vsel %vm359_vm3, %v2065_v18, 0.0 }
 0x186   : > { %v3769_v2 = vadd.f32 %v3655_v20, %v1503_v0  ;;  %v1472_v41 = vld [vmem:[#allocation2 + $0xf8] sm:$0xff]  ;;  %v2067_v0 = vmul.f32 %v3253_v27, %v3253_v27 }
 0x187   : > { %v2630_v48 = vpack.c.bf16 %v1542_v24, %v1542_v24  ;;  %v1956_v49 = vsel %vm359_vm3, %v1542_v24, 0.0  ;;  %v2062_v10 = vmul.f32 %v1542_v24, %v1542_v24  ;;  %v1543_v52 = vadd.f32 %v3655_v20, %v1472_v41  ;;  %v1504_v16 = vld [vmem:[#allocation2 + $0x1f8] sm:$0xff] }
 0x188   : > { %v1957_v1 = vadd.f32 %v1956_v49, %v1955_v23  ;;  %v2662_v25 = vpack.c.bf16 %v3769_v2, %v3769_v2  ;;  %v3786_v44 = vadd.f32 %v3655_v20, %v1504_v16  ;;  %v1962_v20 = vsel %vm359_vm3, %v3215_v59, 0.0 }
 0x189   : > { %1863 = vst.msk [vmem:[%s3203_s6 + $0x78] sm:$0xf] %vm1832_vm4, %v2630_v48  ;;  %v2155_v31 = vsel %vm359_vm3, %v2062_v10, 0.0  ;;  %v2631_v32 = vpack.c.bf16 %v1543_v52, %v1543_v52  ;;  %v1958_v33 = vsel %vm359_vm3, %v1543_v52, 0.0  ;;  %v2063_v63 = vmul.f32 %v1543_v52, %v1543_v52 }
 0x18a   : > { %v2156_v35 = vadd.f32 %v2155_v31, %v2154_v26  ;;  %v1959_v37 = vadd.f32 %v1958_v33, %v1957_v1  ;;  %1895 = vst.msk [vmem:[%s3203_s6 + $0xf8] sm:$0xf] %vm1832_vm4, %v2662_v25  ;;  %v2663_v53 = vpack.c.bf16 %v3786_v44, %v3786_v44  ;;  %v2163_v23 = vsel %vm359_vm3, %v2066_v50, 0.0 }
 0x18b   : > { %1864 = vst.msk [vmem:[%s3203_s6 + $0x7c] sm:$0xf] %vm1832_vm4, %v2631_v32  ;;  %v2157_v19 = vsel %vm359_vm3, %v2063_v63, 0.0  ;;  %v1966_v59 = vsel %vm359_vm3, %v3253_v27, 0.0  ;;  %v2068_v41 = vmul.f32 %v3264_v43, %v3264_v43  ;;  %v2165_v10 = vsel %vm359_vm3, %v2067_v0, 0.0 }
 0x18c   : > { %v1961_v46 = vadd.f32 %v1960_v8, %v1959_v37  ;;  %v2158_v36 = vadd.f32 %v2157_v19, %v2156_v35  ;;  %1896 = vst.msk [vmem:[%s3203_s6 + $0xfc] sm:$0xf] %vm1832_vm4, %v2663_v53  ;;  %v2069_v52 = vmul.f32 %v3285_v60, %v3285_v60  ;;  %v1970_v27 = vsel %vm359_vm3, %v3285_v60, 0.0 }
 0x18d   : > { %v2167_v26 = vsel %vm359_vm3, %v2068_v41, 0.0  ;;  %v2070_v1 = vmul.f32 %v3296_v12, %v3296_v12  ;;  %v1972_v43 = vsel %vm359_vm3, %v3296_v12, 0.0  ;;  %v2071_v33 = vmul.f32 %v3317_v28, %v3317_v28 }
 0x18e   : > { %v1963_v55 = vadd.f32 %v1962_v20, %v1961_v46  ;;  %v2160_v57 = vadd.f32 %v2159_v54, %v2158_v36  ;;  %v2169_v32 = vsel %vm359_vm3, %v2069_v52, 0.0  ;;  %v1974_v60 = vsel %vm359_vm3, %v3317_v28, 0.0 }
 0x18f   : > { %v2171_v37 = vsel %vm359_vm3, %v2070_v1, 0.0  ;;  %v2072_v8 = vmul.f32 %v3336_v56, %v3336_v56  ;;  %v2173_v46 = vsel %vm359_vm3, %v2071_v33, 0.0  ;;  %v1976_v12 = vsel %vm359_vm3, %v3336_v56, 0.0 }
 0x190   : > { %v1965_v47 = vadd.f32 %v1964_v62, %v1963_v55  ;;  %v2162_v24 = vadd.f32 %v2161_v58, %v2160_v57  ;;  %v2073_v36 = vmul.f32 %v3366_v15, %v3366_v15  ;;  %v1978_v28 = vsel %vm359_vm3, %v3366_v15, 0.0 }
 0x191   : > { %v2175_v20 = vsel %vm359_vm3, %v2072_v8, 0.0  ;;  %v2074_v50 = vmul.f32 %v3384_v39, %v3384_v39  ;;  %v1980_v56 = vsel %vm359_vm3, %v3384_v39, 0.0  ;;  %v2075_v62 = vmul.f32 %v3412_v3, %v3412_v3 }
 0x192   : > { %v1967_v48 = vadd.f32 %v1966_v59, %v1965_v47  ;;  %v2164_v49 = vadd.f32 %v2163_v23, %v2162_v24  ;;  %v2177_v58 = vsel %vm359_vm3, %v2073_v36, 0.0  ;;  %v1982_v15 = vsel %vm359_vm3, %v3412_v3, 0.0 }
 0x193   : > { %v2179_v24 = vsel %vm359_vm3, %v2074_v50, 0.0  ;;  %v2076_v23 = vmul.f32 %v3429_v30, %v3429_v30  ;;  %v1984_v39 = vsel %vm359_vm3, %v3429_v30, 0.0  ;;  %v1986_v3 = vsel %vm359_vm3, %v3457_v61, 0.0 }
 0x194   : > { %v1969_v16 = vadd.f32 %v1968_v14, %v1967_v48  ;;  %v2166_v21 = vadd.f32 %v2165_v10, %v2164_v49  ;;  %v2181_v48 = vsel %vm359_vm3, %v2075_v62, 0.0  ;;  %v2077_v49 = vmul.f32 %v3457_v61, %v3457_v61 }
 0x195   : > { %v2183_v52 = vsel %vm359_vm3, %v2076_v23, 0.0  ;;  %v1988_v30 = vsel %vm359_vm3, %v3473_v22, 0.0  ;;  %v2079_v1 = vmul.f32 %v3502_v51, %v3502_v51  ;;  %v1990_v61 = vsel %vm359_vm3, %v3502_v51, 0.0 }
 0x196   : > { %v1971_v25 = vadd.f32 %v1970_v27, %v1969_v16  ;;  %v2168_v31 = vadd.f32 %v2167_v26, %v2166_v21  ;;  %v2078_v16 = vmul.f32 %v3473_v22, %v3473_v22  ;;  %v2185_v27 = vsel %vm359_vm3, %v2077_v49, 0.0 }
 0x197   : > { %v1992_v22 = vsel %vm359_vm3, %v3518_v13, 0.0  ;;  %v1994_v51 = vsel %vm359_vm3, %v3546_v45, 0.0  ;;  %v2084_v50 = vmul.f32 %v3605_v11, %v3605_v11 }
 0x198   : > { %v1973_v63 = vadd.f32 %v1972_v43, %v1971_v25  ;;  %v2170_v35 = vadd.f32 %v2169_v32, %v2168_v31  ;;  %v2187_v32 = vsel %vm359_vm3, %v2078_v16, 0.0  ;;  %v2080_v43 = vmul.f32 %v3518_v13, %v3518_v13 }
 0x199   : > { %v1996_v13 = vsel %vm359_vm3, %v3565_v6, 0.0  ;;  %v2089_v16 = vmul.f32 %v3700_v4, %v3700_v4 }
 0x19a   : > { %v1975_v18 = vadd.f32 %v1974_v60, %v1973_v63  ;;  %v2172_v19 = vadd.f32 %v2171_v37, %v2170_v35  ;;  %v2189_v35 = vsel %vm359_vm3, %v2079_v1, 0.0  ;;  %v2081_v37 = vmul.f32 %v3546_v45, %v3546_v45 }
 0x19b   : > { %v1998_v45 = vsel %vm359_vm3, %v3593_v42, 0.0 }
 0x19c   : > { %v2174_v53 = vadd.f32 %v2173_v46, %v2172_v19  ;;  %v1977_v54 = vadd.f32 %v1976_v12, %v1975_v18  ;;  %v2191_v18 = vsel %vm359_vm3, %v2080_v43, 0.0  ;;  %v2082_v19 = vmul.f32 %v3565_v6, %v3565_v6 }
 0x19d   : > { %v2193_v36 = vsel %vm359_vm3, %v2081_v37, 0.0  ;;  %v2000_v6 = vsel %vm359_vm3, %v3605_v11, 0.0  ;;  %v2004_v11 = vsel %vm359_vm3, %v3645_v5, 0.0 }
 0x19e   : > { %v1979_v55 = vadd.f32 %v1978_v28, %v1977_v54  ;;  %v2176_v57 = vadd.f32 %v2175_v20, %v2174_v53  ;;  %v2083_v53 = vmul.f32 %v3593_v42, %v3593_v42  ;;  %v2195_v28 = vsel %vm359_vm3, %v2082_v19, 0.0 }
 0x19f   : > { %v2002_v42 = vsel %vm359_vm3, %v3631_v38, 0.0  ;;  %v2018_v19 = vsel %vm359_vm3, %v3759_v7, 0.0 }
 0x1a0   : > { %v1981_v0 = vadd.f32 %v1980_v56, %v1979_v55  ;;  %v2178_v47 = vadd.f32 %v2177_v58, %v2176_v57  ;;  %v2197_v58 = vsel %vm359_vm3, %v2083_v53, 0.0  ;;  %v2085_v56 = vmul.f32 %v3631_v38, %v3631_v38 }
 0x1a1   : > { %v2006_v38 = vsel %vm359_vm3, %v3670_v40, 0.0  ;;  %v2095_v53 = vmul.f32 %v3786_v44, %v3786_v44 }
 0x1a2   : > { %v1983_v59 = vadd.f32 %v1982_v15, %v1981_v0  ;;  %v2180_v41 = vadd.f32 %v2179_v24, %v2178_v47  ;;  %v2199_v47 = vsel %vm359_vm3, %v2084_v50, 0.0  ;;  %v2086_v24 = vmul.f32 %v3645_v5, %v3645_v5 }
 0x1a3   : > { %v2008_v5 = vsel %vm359_vm3, %v3683_v17, 0.0  ;;  %v2221_v50 = vsel %vm359_vm3, %v2095_v53, 0.0 }
 0x1a4   : > { %v1985_v10 = vadd.f32 %v1984_v39, %v1983_v59  ;;  %v2182_v14 = vadd.f32 %v2181_v48, %v2180_v41  ;;  %v2201_v59 = vsel %vm359_vm3, %v2085_v56, 0.0  ;;  %v2087_v41 = vmul.f32 %v3670_v40, %v3670_v40 }
 0x1a5   : > { %v2203_v49 = vsel %vm359_vm3, %v2086_v24, 0.0  ;;  %v2010_v40 = vsel %vm359_vm3, %v3700_v4, 0.0  ;;  %v2014_v4 = vsel %vm359_vm3, %v3730_v34, 0.0 }
 0x1a6   : > { %v1987_v21 = vadd.f32 %v1986_v3, %v1985_v10  ;;  %v2184_v26 = vadd.f32 %v2183_v52, %v2182_v14  ;;  %v2088_v10 = vmul.f32 %v3683_v17, %v3683_v17  ;;  %v2205_v3 = vsel %vm359_vm3, %v2087_v41, 0.0 }
 0x1a7   : > { %v2012_v17 = vsel %vm359_vm3, %v3712_v9, 0.0 }
 0x1a8   : > { %v1989_v25 = vadd.f32 %v1988_v30, %v1987_v21  ;;  %v2186_v31 = vadd.f32 %v2185_v27, %v2184_v26  ;;  %v2207_v27 = vsel %vm359_vm3, %v2088_v10, 0.0  ;;  %v2090_v30 = vmul.f32 %v3712_v9, %v3712_v9 }
 0x1a9   : > { %v2016_v9 = vsel %vm359_vm3, %v3741_v29, 0.0 }
 0x1aa   : > { %v1991_v33 = vadd.f32 %v1990_v61, %v1989_v25  ;;  %v2188_v63 = vadd.f32 %v2187_v32, %v2186_v31  ;;  %v2209_v31 = vsel %vm359_vm3, %v2089_v16, 0.0  ;;  %v2091_v32 = vmul.f32 %v3730_v34, %v3730_v34 }
 0x1ac   : > { %v1993_v60 = vadd.f32 %v1992_v22, %v1991_v33  ;;  %v2190_v8 = vadd.f32 %v2189_v35, %v2188_v63  ;;  %v2211_v33 = vsel %vm359_vm3, %v2090_v30, 0.0  ;;  %v2092_v63 = vmul.f32 %v3741_v29, %v3741_v29 }
 0x1ad   : > { %v2213_v37 = vsel %vm359_vm3, %v2091_v32, 0.0 }
 0x1ae   : > { %v2192_v46 = vadd.f32 %v2191_v18, %v2190_v8  ;;  %v1995_v12 = vadd.f32 %v1994_v51, %v1993_v60  ;;  %v2093_v60 = vmul.f32 %v3759_v7, %v3759_v7  ;;  %v2094_v8 = vmul.f32 %v3769_v2, %v3769_v2 }
 0x1af   : > { %v2215_v34 = vsel %vm359_vm3, %v2092_v63, 0.0 }
 0x1b0   : > { %v2194_v54 = vadd.f32 %v2193_v36, %v2192_v46  ;;  %v1997_v20 = vadd.f32 %v1996_v13, %v1995_v12  ;;  %v2020_v46 = vsel %vm359_vm3, %v3769_v2, 0.0  ;;  %v2217_v29 = vsel %vm359_vm3, %v2093_v60, 0.0 }
 0x1b1   : > { %v2219_v13 = vsel %vm359_vm3, %v2094_v8, 0.0 }
 0x1b2   : > { %v2196_v55 = vadd.f32 %v2195_v28, %v2194_v54  ;;  %v1999_v57 = vadd.f32 %v1998_v45, %v1997_v20  ;;  %v2022_v28 = vsel %vm359_vm3, %v3786_v44, 0.0 }
 0x1b4   : > { %v2198_v62 = vadd.f32 %v2197_v58, %v2196_v55  ;;  %v2001_v0 = vadd.f32 %v2000_v6, %v1999_v57 }
 0x1b6   : > { %v2200_v15 = vadd.f32 %v2199_v47, %v2198_v62  ;;  %v2003_v23 = vadd.f32 %v2002_v42, %v2001_v0 }
 0x1b8   : > { %v2202_v48 = vadd.f32 %v2201_v59, %v2200_v15  ;;  %v2005_v39 = vadd.f32 %v2004_v11, %v2003_v23 }
 0x1ba   : > { %v2204_v14 = vadd.f32 %v2203_v49, %v2202_v48  ;;  %v2007_v52 = vadd.f32 %v2006_v38, %v2005_v39 }
 0x1bc   : > { %v2206_v21 = vadd.f32 %v2205_v3, %v2204_v14  ;;  %v2009_v26 = vadd.f32 %v2008_v5, %v2007_v52 }
 0x1be   : > { %v2208_v1 = vadd.f32 %v2207_v27, %v2206_v21  ;;  %v2011_v25 = vadd.f32 %v2010_v40, %v2009_v26 }
 0x1c0   : > { %v2210_v61 = vadd.f32 %v2209_v31, %v2208_v1  ;;  %v2013_v43 = vadd.f32 %v2012_v17, %v2011_v25 }
 0x1c2   : > { %v2212_v35 = vadd.f32 %v2211_v33, %v2210_v61  ;;  %v2015_v22 = vadd.f32 %v2014_v4, %v2013_v43 }
 0x1c4   : > { %v2214_v18 = vadd.f32 %v2213_v37, %v2212_v35  ;;  %v2017_v51 = vadd.f32 %v2016_v9, %v2015_v22 }
 0x1c6   : > { %v2216_v12 = vadd.f32 %v2215_v34, %v2214_v18  ;;  %v2019_v36 = vadd.f32 %v2018_v19, %v2017_v51 }
 0x1c8   : > { %v2218_v54 = vadd.f32 %v2217_v29, %v2216_v12  ;;  %v2021_v20 = vadd.f32 %v2020_v46, %v2019_v36 }
 0x1ca   : > { %v2220_v45 = vadd.f32 %v2219_v13, %v2218_v54  ;;  %v2023_v7 = vadd.f32 %v2022_v28, %v2021_v20 }
 0x1cc   : > { %v2024_v2 = vrot.slane %v2023_v7, 4  ;;  %v2222_v55 = vadd.f32 %v2221_v50, %v2220_v45 }
 0x1ce   : > { %v2025_v57 = vadd.f32 %v2024_v2, %v2023_v7  ;;  %v2223_v58 = vrot.slane %v2222_v55, 4 }
 0x1d0   : > { %v2026_v6 = vrot.slane %v2025_v57, 2  ;;  %v2224_v56 = vadd.f32 %v2223_v58, %v2222_v55 }
 0x1d2   : > { %v2027_v62 = vadd.f32 %v2026_v6, %v2025_v57  ;;  %v2225_v0 = vrot.slane %v2224_v56, 2 }
 0x1d4   : > { %v2028_v47 = vrot.slane %v2027_v62, 1  ;;  %v2226_v42 = vadd.f32 %v2225_v0, %v2224_v56 }
 0x1d6   : > { %v2029_v44 = vadd.f32 %v2028_v47, %v2027_v62  ;;  %v2227_v24 = vrot.slane %v2226_v42, 1 }
 0x1d8   : > { %2031 = vst.msk [vmem:[%s347_s11] sm:$0x1] %vm2030_vm5, %v2029_v44  ;;  %v2228_v15 = vadd.f32 %v2227_v24, %v2226_v42 }
 0x1da   : > { %2229 = vst.msk [vmem:[%s353_s14] sm:$0x1] %vm2030_vm5, %v2228_v15 }
 0x1db PF: > { %s16_s20 = sadd.s32 1, %s2840_s20   ;;  %s3976_s18 = smov %s2836_s19 }
 0x1dc   : > { %p13_p6 = scmp.ge.s32.totalorder %s16_s20, 51   ;;  %s3977_s19 = smov %s3979_s21 }
 0x1de   :  { %15 = sbr.rel (!%p13_p6) target bundleno = 2 (0x2), region = 100 }

</bundles_post_ra>
